<compile_context>
chip_gen: v7x
topology: tpu7x:2x2x1
jax: 0.10.0
libtpu: 0.0.40
codegen_flags: <defaults>
</compile_context>

<pallas_src>
import jax
import jax.numpy as jnp
from jax.experimental import pallas as pl
from jax.experimental.pallas import tpu as pltpu


def _round_up(v, m):
    return (v + m - 1) // m * m


# ----------------------------------------------------------------------------- kernel
def _gru_gating_kernel(x_ref, h_ref, wih_ref, whh_ref, bias_ref, o_ref):
    """PyTorch nn.GRUCell semantics on one (TM, Dp) row tile:
       r  = sigmoid(x W_ir^T + h W_hr^T + (b_ir + b_hr))
       z  = sigmoid(x W_iz^T + h W_hz^T + (b_iz + b_hz))
       n  = tanh   (x W_in^T + b_in + r * (h W_hn^T + b_hn))
       h' = (1 - z) * n + z * h
    """
    d = x_ref.shape[-1]                 # padded feature width (multiple of 128)
    w_dtype = wih_ref.dtype

    x = x_ref[...]
    h = h_ref[...]

    # Fused 3-gate matmuls: (TM, Dp) @ (Dp, 3*Dp).  MXU inputs in the (bf16) weight
    # dtype, f32 accumulation.
    gi = jnp.dot(x.astype(w_dtype), wih_ref[...], preferred_element_type=jnp.float32)
    gh = jnp.dot(h.astype(w_dtype), whh_ref[...], preferred_element_type=jnp.float32)

    b_r = bias_ref[0:1, :]              # b_ir + b_hr   (1, Dp)
    b_z = bias_ref[1:2, :]              # b_iz + b_hz
    b_in = bias_ref[2:3, :]
    b_hn = bias_ref[3:4, :]

    r = jax.nn.sigmoid(gi[:, :d] + gh[:, :d] + b_r)
    z = jax.nn.sigmoid(gi[:, d:2 * d] + gh[:, d:2 * d] + b_z)
    n = jnp.tanh(gi[:, 2 * d:] + b_in + r * (gh[:, 2 * d:] + b_hn))

    h_f32 = h.astype(jnp.float32)
    o_ref[...] = ((1.0 - z) * n + z * h_f32).astype(o_ref.dtype)


# ------------------------------------------------------------------------ param packing
def pack_gru_params(params, dim, compute_dtype=jnp.bfloat16):
    """One-time packing of nn.GRUCell weights (call OUTSIDE the per-step hot path).

    Returns:
      w_ih: (Dp, 3*Dp) = [W_ir^T | W_iz^T | W_in^T], zero-padded, compute_dtype (bf16
            by default -> full-rate MXU and half the resident VMEM / DMA bytes)
      w_hh: (Dp, 3*Dp) = [W_hr^T | W_hz^T | W_hn^T]
      bias: (4, Dp) f32 = [b_ir+b_hr, b_iz+b_hz, b_in, b_hn]
    """
    d = dim
    d_pad = _round_up(max(d, 128), 128)

    w_ih = params["w_ih"].reshape(3, d, d)   # gate order [r, z, n], each (d_out, d_in)
    w_hh = params["w_hh"].reshape(3, d, d)
    b_ih = params["b_ih"].reshape(3, d)
    b_hh = params["b_hh"].reshape(3, d)

    def pack_w(w):
        wt = jnp.transpose(w, (0, 2, 1))                              # per-gate W^T
        wt = jnp.pad(wt, ((0, 0), (0, d_pad - d), (0, d_pad - d)))
        return jnp.concatenate([wt[0], wt[1], wt[2]], axis=1).astype(compute_dtype)

    bias = jnp.stack(
        [b_ih[0] + b_hh[0], b_ih[1] + b_hh[1], b_ih[2], b_hh[2]], axis=0)
    bias = jnp.pad(bias, ((0, 0), (0, d_pad - d))).astype(jnp.float32)

    return {"w_ih": pack_w(w_ih), "w_hh": pack_w(w_hh), "bias": bias,
            "dim": d, "dim_padded": d_pad}


# ------------------------------------------------------------------------ tiling policy
def _device_vmem_budget_bytes():
    """Usable VMEM budget for this chip generation (headroom below physical)."""
    cap = 64 << 20                       # conservative default == v7x per-TC VMEM
    try:
        info = pltpu.get_tpu_info()
        c = getattr(info, "vmem_capacity_bytes", None)
        if c:
            cap = int(c)
    except Exception:
        pass
    return cap * 7 // 8                  # leave headroom for Mosaic scratch


def _pick_tm(M, d_pad, x_itemsize, w_itemsize, budget):
    """Largest row-tile that fits the VMEM budget, with >= 2 tiles when M allows
    (v7x has 2 TensorCores sharded over the 'parallel' grid axis)."""
    sublane = {4: 8, 2: 16, 1: 32}.get(x_itemsize, 8)

    if M <= sublane:
        tm_max = sublane
    else:
        tm_max = min(512, max(sublane, _round_up(pl.cdiv(M, 2), sublane)))

    def vmem_bytes(tm):
        resident = 2 * d_pad * 3 * d_pad * w_itemsize + 4 * d_pad * 4   # weights + bias
        streamed = 2 * 3 * tm * d_pad * x_itemsize                      # x/h/out, 2-deep
        temps = 11 * tm * d_pad * 4                                     # gi/gh + gate f32
        return resident + streamed + temps + (2 << 20)

    tm = tm_max
    while tm > sublane and vmem_bytes(tm) > budget:
        tm = max(sublane, _round_up(tm // 2, sublane))
    return tm, vmem_bytes(tm)


# ------------------------------------------------------------------------------ wrapper
def gru_gating(x, residual, packed):
    """Pallas implementation of GRUGating.forward(x, residual) with pre-packed params."""
    b, n, d = x.shape
    assert packed["dim"] == d
    d_pad = packed["dim_padded"]
    M = b * n

    x2 = x.reshape(M, d)
    h2 = residual.reshape(M, d)
    if d_pad != d:
        # Only in the lane-unaligned case do we pay a pad pass over x / residual.
        x2 = jnp.pad(x2, ((0, 0), (0, d_pad - d)))
        h2 = jnp.pad(h2, ((0, 0), (0, d_pad - d)))

    x_itemsize = jnp.dtype(x.dtype).itemsize
    w_itemsize = jnp.dtype(packed["w_ih"].dtype).itemsize

    budget = _device_vmem_budget_bytes()
    tm, need = _pick_tm(M, d_pad, x_itemsize, w_itemsize, budget)
    num_tiles = pl.cdiv(M, tm)           # partial last block handled by Pallas masking
    vmem_limit = int(min(max(need * 5 // 4, 32 << 20), budget))

    cost = pl.CostEstimate(
        flops=12 * M * d_pad * d_pad,                 # 2 matmuls of (M, Dp) x (Dp, 3Dp)
        transcendentals=3 * M * d_pad,                # 2 sigmoid + 1 tanh per element
        bytes_accessed=(3 * M * d_pad * x_itemsize    # x, h, out
                        + 2 * d_pad * 3 * d_pad * w_itemsize
                        + 4 * d_pad * 4),
    )

    args = (x2, h2, packed["w_ih"], packed["w_hh"], packed["bias"])

    def build(single_buffer_weights):
        resident_kwargs = (
            dict(pipeline_mode=pl.Buffered(1)) if single_buffer_weights else {})
        return pl.pallas_call(
            _gru_gating_kernel,
            out_shape=jax.ShapeDtypeStruct((M, d_pad), x.dtype),
            grid=(num_tiles,),
            in_specs=[
                pl.BlockSpec((tm, d_pad), lambda i: (i, 0)),            # x rows
                pl.BlockSpec((tm, d_pad), lambda i: (i, 0)),            # residual rows
                pl.BlockSpec((d_pad, 3 * d_pad), lambda i: (0, 0),      # W_ih^T (resident)
                             **resident_kwargs),
                pl.BlockSpec((d_pad, 3 * d_pad), lambda i: (0, 0),      # W_hh^T (resident)
                             **resident_kwargs),
                pl.BlockSpec((4, d_pad), lambda i: (0, 0),              # folded biases
                             **resident_kwargs),
            ],
            out_specs=pl.BlockSpec((tm, d_pad), lambda i: (i, 0)),
            compiler_params=pltpu.CompilerParams(
                dimension_semantics=("parallel",),    # independent row tiles -> megacore
                vmem_limit_bytes=vmem_limit,
            ),
            cost_estimate=cost,
        )

    try:
        out = build(True)(*args)
        out = jax.block_until_ready(out)
    except Exception:
        # Fallback: double-buffered resident operands (previously validated config).
        out = build(False)(*args)

    if d_pad != d:
        out = out[:, :d]
    return out.reshape(b, n, d)


# ---------------------------------------------------------------------------- reference
def _reference_gru_gating(x, residual, params):
    """Pure-JAX reference matching PyTorch nn.GRUCell."""
    b, n, d = x.shape
    xi = x.reshape(-1, d)
    h = residual.reshape(-1, d)
    gi = xi @ params["w_ih"].T + params["b_ih"]
    gh = h @ params["w_hh"].T + params["b_hh"]
    i_r, i_z, i_n = gi[:, :d], gi[:, d:2 * d], gi[:, 2 * d:]
    h_r, h_z, h_n = gh[:, :d], gh[:, d:2 * d], gh[:, 2 * d:]
    r = jax.nn.sigmoid(i_r + h_r)
    z = jax.nn.sigmoid(i_z + h_z)
    nn_ = jnp.tanh(i_n + r * h_n)
    out = (1.0 - z) * nn_ + z * h
    return out.reshape(b, n, d)


def init_params(key, dim, dtype=jnp.float32):
    """Deterministic init mirroring nn.GRUCell shapes: U(-1/sqrt(dim), 1/sqrt(dim))."""
    k1, k2, k3, k4 = jax.random.split(key, 4)
    bound = 1.0 / jnp.sqrt(jnp.asarray(dim, dtype))
    return {
        "w_ih": jax.random.uniform(k1, (3 * dim, dim), dtype, -bound, bound),
        "w_hh": jax.random.uniform(k2, (3 * dim, dim), dtype, -bound, bound),
        "b_ih": jax.random.uniform(k3, (3 * dim,), dtype, -bound, bound),
        "b_hh": jax.random.uniform(k4, (3 * dim,), dtype, -bound, bound),
    }


if __name__ == "__main__":
    key = jax.random.PRNGKey(0)
    kx, kr, kp = jax.random.split(key, 3)

    B, N, D = 2, 8, 32
    x = jax.random.normal(kx, (B, N, D), jnp.float32)
    residual = jax.random.normal(kr, (B, N, D), jnp.float32)
    params = init_params(kp, D)

    ref = _reference_gru_gating(x, residual, params)

    # f32-packed run: tight numerical check of the GRUCell math.
    packed_f32 = pack_gru_params(params, D, compute_dtype=jnp.float32)
    out_f32 = jax.block_until_ready(gru_gating(x, residual, packed_f32))
    assert out_f32.shape == x.shape
    assert jnp.allclose(out_f32, ref, atol=1e-4, rtol=1e-4), float(
        jnp.max(jnp.abs(out_f32 - ref)))

    # bf16-packed run: the recommended fast path (full-rate MXU); gate math stays f32,
    # so only matmul rounding differs -> widened tolerance.
    packed_bf16 = pack_gru_params(params, D)          # compute_dtype defaults to bf16
    out_bf16 = jax.block_until_ready(gru_gating(x, residual, packed_bf16))
    assert out_bf16.shape == x.shape
    assert jnp.allclose(out_bf16, ref, atol=3e-2, rtol=3e-2), float(
        jnp.max(jnp.abs(out_bf16 - ref)))

    print("KERNEL_OK")
</pallas_src>

<mosaic_0001>
module attributes {stable_mosaic.version = 11 : i64} {
  func.func @_gru_gating_kernel(%arg0: i32, %arg1: memref<8x128xf32, #tpu.memory_space<vmem>>, %arg2: memref<8x128xf32, #tpu.memory_space<vmem>>, %arg3: memref<128x384xf32, #tpu.memory_space<vmem>>, %arg4: memref<128x384xf32, #tpu.memory_space<vmem>>, %arg5: memref<4x128xf32, #tpu.memory_space<vmem>>, %arg6: memref<8x128xf32, #tpu.memory_space<vmem>>) attributes {dimension_semantics = [#tpu.dimension_semantics<parallel>], iteration_bounds = array<i64: 2>, scalar_prefetch = 0 : i64, scratch_operands = 0 : i64, tpu.core_type = #tpu.core_type<tc>, window_params = [{transform_indices = @transform_0, window_bounds = array<i64: 8, 128>}, {transform_indices = @transform_1, window_bounds = array<i64: 8, 128>}, {pipeline_mode = #tpu.pipeline_mode<synchronous>, transform_indices = @transform_2, window_bounds = array<i64: 128, 384>}, {pipeline_mode = #tpu.pipeline_mode<synchronous>, transform_indices = @transform_3, window_bounds = array<i64: 128, 384>}, {pipeline_mode = #tpu.pipeline_mode<synchronous>, transform_indices = @transform_4, window_bounds = array<i64: 4, 128>}, {transform_indices = @transform_5, window_bounds = array<i64: 8, 128>}]} {
    %c0 = arith.constant 0 : index
    %c0_0 = arith.constant 0 : index
    %0 = vector.load %arg1[%c0, %c0_0] : memref<8x128xf32, #tpu.memory_space<vmem>>, vector<8x128xf32>
    %c0_1 = arith.constant 0 : index
    %c0_2 = arith.constant 0 : index
    %1 = vector.load %arg2[%c0_1, %c0_2] : memref<8x128xf32, #tpu.memory_space<vmem>>, vector<8x128xf32>
    %c0_3 = arith.constant 0 : index
    %c0_4 = arith.constant 0 : index
    %2 = vector.load %arg3[%c0_3, %c0_4] : memref<128x384xf32, #tpu.memory_space<vmem>>, vector<128x384xf32>
    %cst = arith.constant dense<0.000000e+00> : vector<8x384xf32>
    %3 = tpu.matmul %0, %2, %cst {dimension_numbers = #tpu.dot_dimension_numbers<[1], [0], [0], [1], [0, 0, 1, 1], [], []>} : vector<8x128xf32>, vector<128x384xf32>, vector<8x384xf32> -> vector<8x384xf32>
    %c0_5 = arith.constant 0 : index
    %c0_6 = arith.constant 0 : index
    %4 = vector.load %arg4[%c0_5, %c0_6] : memref<128x384xf32, #tpu.memory_space<vmem>>, vector<128x384xf32>
    %cst_7 = arith.constant dense<0.000000e+00> : vector<8x384xf32>
    %5 = tpu.matmul %1, %4, %cst_7 {dimension_numbers = #tpu.dot_dimension_numbers<[1], [0], [0], [1], [0, 0, 1, 1], [], []>} : vector<8x128xf32>, vector<128x384xf32>, vector<8x384xf32> -> vector<8x384xf32>
    %c0_8 = arith.constant 0 : index
    %c0_9 = arith.constant 0 : index
    %6 = vector.load %arg5[%c0_8, %c0_9] : memref<4x128xf32, #tpu.memory_space<vmem>>, vector<1x128xf32>
    %c1 = arith.constant 1 : index
    %c0_10 = arith.constant 0 : index
    %7 = vector.load %arg5[%c1, %c0_10] : memref<4x128xf32, #tpu.memory_space<vmem>>, vector<1x128xf32>
    %c2 = arith.constant 2 : index
    %c0_11 = arith.constant 0 : index
    %8 = vector.load %arg5[%c2, %c0_11] : memref<4x128xf32, #tpu.memory_space<vmem>>, vector<1x128xf32>
    %c3 = arith.constant 3 : index
    %c0_12 = arith.constant 0 : index
    %9 = vector.load %arg5[%c3, %c0_12] : memref<4x128xf32, #tpu.memory_space<vmem>>, vector<1x128xf32>
    %10 = vector.extract_strided_slice %3 {offsets = [0, 0], sizes = [8, 128], strides = [1, 1]} : vector<8x384xf32> to vector<8x128xf32>
    %11 = vector.extract_strided_slice %5 {offsets = [0, 0], sizes = [8, 128], strides = [1, 1]} : vector<8x384xf32> to vector<8x128xf32>
    %12 = arith.addf %10, %11 : vector<8x128xf32>
    %13 = vector.broadcast %6 : vector<1x128xf32> to vector<8x128xf32>
    %14 = arith.addf %12, %13 : vector<8x128xf32>
    %15 = arith.negf %14 : vector<8x128xf32>
    %16 = math.exp %15 : vector<8x128xf32>
    %cst_13 = arith.constant 1.000000e+00 : f32
    %17 = vector.broadcast %cst_13 : f32 to vector<8x128xf32>
    %18 = arith.addf %17, %16 : vector<8x128xf32>
    %19 = arith.divf %17, %18 : vector<8x128xf32>
    %20 = vector.extract_strided_slice %3 {offsets = [0, 128], sizes = [8, 128], strides = [1, 1]} : vector<8x384xf32> to vector<8x128xf32>
    %21 = vector.extract_strided_slice %5 {offsets = [0, 128], sizes = [8, 128], strides = [1, 1]} : vector<8x384xf32> to vector<8x128xf32>
    %22 = arith.addf %20, %21 : vector<8x128xf32>
    %23 = vector.broadcast %7 : vector<1x128xf32> to vector<8x128xf32>
    %24 = arith.addf %22, %23 : vector<8x128xf32>
    %25 = arith.negf %24 : vector<8x128xf32>
    %26 = math.exp %25 : vector<8x128xf32>
    %cst_14 = arith.constant 1.000000e+00 : f32
    %27 = vector.broadcast %cst_14 : f32 to vector<8x128xf32>
    %28 = arith.addf %27, %26 : vector<8x128xf32>
    %29 = arith.divf %27, %28 : vector<8x128xf32>
    %30 = vector.extract_strided_slice %3 {offsets = [0, 256], sizes = [8, 128], strides = [1, 1]} : vector<8x384xf32> to vector<8x128xf32>
    %31 = vector.broadcast %8 : vector<1x128xf32> to vector<8x128xf32>
    %32 = arith.addf %30, %31 : vector<8x128xf32>
    %33 = vector.extract_strided_slice %5 {offsets = [0, 256], sizes = [8, 128], strides = [1, 1]} : vector<8x384xf32> to vector<8x128xf32>
    %34 = vector.broadcast %9 : vector<1x128xf32> to vector<8x128xf32>
    %35 = arith.addf %33, %34 : vector<8x128xf32>
    %36 = arith.mulf %19, %35 : vector<8x128xf32>
    %37 = arith.addf %32, %36 : vector<8x128xf32>
    %38 = math.tanh %37 : vector<8x128xf32>
    %cst_15 = arith.constant 1.000000e+00 : f32
    %39 = vector.broadcast %cst_15 : f32 to vector<8x128xf32>
    %40 = arith.subf %39, %29 : vector<8x128xf32>
    %41 = arith.mulf %40, %38 : vector<8x128xf32>
    %42 = arith.mulf %29, %1 : vector<8x128xf32>
    %43 = arith.addf %41, %42 : vector<8x128xf32>
    %c0_16 = arith.constant 0 : index
    %c0_17 = arith.constant 0 : index
    %44 = vector.load %arg6[%c0_16, %c0_17] : memref<8x128xf32, #tpu.memory_space<vmem>>, vector<8x128xf32>
    tpu.vector_store %arg6[%c0_16, %c0_17], %43 {strides = array<i32>} : memref<8x128xf32, #tpu.memory_space<vmem>>, vector<8x128xf32>,
    return
  }
  func.func @transform_0(%arg0: i32) -> (i32, i32) {
    %c0_i32 = arith.constant 0 : i32
    %c0_i32_0 = arith.constant 0 : i32
    return %arg0, %c0_i32 : i32, i32
  }
  func.func @transform_1(%arg0: i32) -> (i32, i32) {
    %c0_i32 = arith.constant 0 : i32
    %c0_i32_0 = arith.constant 0 : i32
    return %arg0, %c0_i32 : i32, i32
  }
  func.func @transform_2(%arg0: i32) -> (i32, i32) {
    %c0_i32 = arith.constant 0 : i32
    %c0_i32_0 = arith.constant 0 : i32
    %c0_i32_1 = arith.constant 0 : i32
    return %c0_i32, %c0_i32_0 : i32, i32
  }
  func.func @transform_3(%arg0: i32) -> (i32, i32) {
    %c0_i32 = arith.constant 0 : i32
    %c0_i32_0 = arith.constant 0 : i32
    %c0_i32_1 = arith.constant 0 : i32
    return %c0_i32, %c0_i32_0 : i32, i32
  }
  func.func @transform_4(%arg0: i32) -> (i32, i32) {
    %c0_i32 = arith.constant 0 : i32
    %c0_i32_0 = arith.constant 0 : i32
    %c0_i32_1 = arith.constant 0 : i32
    return %c0_i32, %c0_i32_0 : i32, i32
  }
  func.func @transform_5(%arg0: i32) -> (i32, i32) {
    %c0_i32 = arith.constant 0 : i32
    %c0_i32_0 = arith.constant 0 : i32
    return %arg0, %c0_i32 : i32, i32
  }
}

module attributes {stable_mosaic.version = 11 : i64} {
  func.func @_gru_gating_kernel(%arg0: i32, %arg1: memref<8x128xf32, #tpu.memory_space<vmem>>, %arg2: memref<8x128xf32, #tpu.memory_space<vmem>>, %arg3: memref<128x384xf32, #tpu.memory_space<vmem>>, %arg4: memref<128x384xf32, #tpu.memory_space<vmem>>, %arg5: memref<4x128xf32, #tpu.memory_space<vmem>>, %arg6: memref<8x128xf32, #tpu.memory_space<vmem>>) attributes {dimension_semantics = [#tpu.dimension_semantics<parallel>], iteration_bounds = array<i64: 2>, scalar_prefetch = 0 : i64, scratch_operands = 0 : i64, tpu.core_type = #tpu.core_type<tc>, window_params = [{transform_indices = @transform_0, window_bounds = array<i64: 8, 128>}, {transform_indices = @transform_1, window_bounds = array<i64: 8, 128>}, {pipeline_mode = #tpu.pipeline_mode<synchronous>, transform_indices = @transform_2, window_bounds = array<i64: 128, 384>}, {pipeline_mode = #tpu.pipeline_mode<synchronous>, transform_indices = @transform_3, window_bounds = array<i64: 128, 384>}, {pipeline_mode = #tpu.pipeline_mode<synchronous>, transform_indices = @transform_4, window_bounds = array<i64: 4, 128>}, {transform_indices = @transform_5, window_bounds = array<i64: 8, 128>}]} {
    %c0 = arith.constant 0 : index
    %c0_0 = arith.constant 0 : index
    %0 = vector.load %arg1[%c0, %c0_0] : memref<8x128xf32, #tpu.memory_space<vmem>>, vector<8x128xf32>
    %c0_1 = arith.constant 0 : index
    %c0_2 = arith.constant 0 : index
    %1 = vector.load %arg2[%c0_1, %c0_2] : memref<8x128xf32, #tpu.memory_space<vmem>>, vector<8x128xf32>
    %c0_3 = arith.constant 0 : index
    %c0_4 = arith.constant 0 : index
    %2 = vector.load %arg3[%c0_3, %c0_4] : memref<128x384xf32, #tpu.memory_space<vmem>>, vector<128x384xf32>
    %cst = arith.constant dense<0.000000e+00> : vector<8x384xf32>
    %3 = tpu.matmul %0, %2, %cst {dimension_numbers = #tpu.dot_dimension_numbers<[1], [0], [0], [1], [0, 0, 1, 1], [], []>} : vector<8x128xf32>, vector<128x384xf32>, vector<8x384xf32> -> vector<8x384xf32>
    %c0_5 = arith.constant 0 : index
    %c0_6 = arith.constant 0 : index
    %4 = vector.load %arg4[%c0_5, %c0_6] : memref<128x384xf32, #tpu.memory_space<vmem>>, vector<128x384xf32>
    %cst_7 = arith.constant dense<0.000000e+00> : vector<8x384xf32>
    %5 = tpu.matmul %1, %4, %cst_7 {dimension_numbers = #tpu.dot_dimension_numbers<[1], [0], [0], [1], [0, 0, 1, 1], [], []>} : vector<8x128xf32>, vector<128x384xf32>, vector<8x384xf32> -> vector<8x384xf32>
    %c0_8 = arith.constant 0 : index
    %c0_9 = arith.constant 0 : index
    %6 = vector.load %arg5[%c0_8, %c0_9] : memref<4x128xf32, #tpu.memory_space<vmem>>, vector<1x128xf32>
    %c1 = arith.constant 1 : index
    %c0_10 = arith.constant 0 : index
    %7 = vector.load %arg5[%c1, %c0_10] : memref<4x128xf32, #tpu.memory_space<vmem>>, vector<1x128xf32>
    %c2 = arith.constant 2 : index
    %c0_11 = arith.constant 0 : index
    %8 = vector.load %arg5[%c2, %c0_11] : memref<4x128xf32, #tpu.memory_space<vmem>>, vector<1x128xf32>
    %c3 = arith.constant 3 : index
    %c0_12 = arith.constant 0 : index
    %9 = vector.load %arg5[%c3, %c0_12] : memref<4x128xf32, #tpu.memory_space<vmem>>, vector<1x128xf32>
    %10 = vector.extract_strided_slice %3 {offsets = [0, 0], sizes = [8, 128], strides = [1, 1]} : vector<8x384xf32> to vector<8x128xf32>
    %11 = vector.extract_strided_slice %5 {offsets = [0, 0], sizes = [8, 128], strides = [1, 1]} : vector<8x384xf32> to vector<8x128xf32>
    %12 = arith.addf %10, %11 : vector<8x128xf32>
    %13 = vector.broadcast %6 : vector<1x128xf32> to vector<8x128xf32>
    %14 = arith.addf %12, %13 : vector<8x128xf32>
    %15 = arith.negf %14 : vector<8x128xf32>
    %16 = math.exp %15 : vector<8x128xf32>
    %cst_13 = arith.constant 1.000000e+00 : f32
    %17 = vector.broadcast %cst_13 : f32 to vector<8x128xf32>
    %18 = arith.addf %17, %16 : vector<8x128xf32>
    %19 = arith.divf %17, %18 : vector<8x128xf32>
    %20 = vector.extract_strided_slice %3 {offsets = [0, 128], sizes = [8, 128], strides = [1, 1]} : vector<8x384xf32> to vector<8x128xf32>
    %21 = vector.extract_strided_slice %5 {offsets = [0, 128], sizes = [8, 128], strides = [1, 1]} : vector<8x384xf32> to vector<8x128xf32>
    %22 = arith.addf %20, %21 : vector<8x128xf32>
    %23 = vector.broadcast %7 : vector<1x128xf32> to vector<8x128xf32>
    %24 = arith.addf %22, %23 : vector<8x128xf32>
    %25 = arith.negf %24 : vector<8x128xf32>
    %26 = math.exp %25 : vector<8x128xf32>
    %cst_14 = arith.constant 1.000000e+00 : f32
    %27 = vector.broadcast %cst_14 : f32 to vector<8x128xf32>
    %28 = arith.addf %27, %26 : vector<8x128xf32>
    %29 = arith.divf %27, %28 : vector<8x128xf32>
    %30 = vector.extract_strided_slice %3 {offsets = [0, 256], sizes = [8, 128], strides = [1, 1]} : vector<8x384xf32> to vector<8x128xf32>
    %31 = vector.broadcast %8 : vector<1x128xf32> to vector<8x128xf32>
    %32 = arith.addf %30, %31 : vector<8x128xf32>
    %33 = vector.extract_strided_slice %5 {offsets = [0, 256], sizes = [8, 128], strides = [1, 1]} : vector<8x384xf32> to vector<8x128xf32>
    %34 = vector.broadcast %9 : vector<1x128xf32> to vector<8x128xf32>
    %35 = arith.addf %33, %34 : vector<8x128xf32>
    %36 = arith.mulf %19, %35 : vector<8x128xf32>
    %37 = arith.addf %32, %36 : vector<8x128xf32>
    %38 = math.tanh %37 : vector<8x128xf32>
    %cst_15 = arith.constant 1.000000e+00 : f32
    %39 = vector.broadcast %cst_15 : f32 to vector<8x128xf32>
    %40 = arith.subf %39, %29 : vector<8x128xf32>
    %41 = arith.mulf %40, %38 : vector<8x128xf32>
    %42 = arith.mulf %29, %1 : vector<8x128xf32>
    %43 = arith.addf %41, %42 : vector<8x128xf32>
    %c0_16 = arith.constant 0 : index
    %c0_17 = arith.constant 0 : index
    %44 = vector.load %arg6[%c0_16, %c0_17] : memref<8x128xf32, #tpu.memory_space<vmem>>, vector<8x128xf32>
    tpu.vector_store %arg6[%c0_16, %c0_17], %43 {strides = array<i32>} : memref<8x128xf32, #tpu.memory_space<vmem>>, vector<8x128xf32>,
    return
  }
  func.func @transform_0(%arg0: i32) -> (i32, i32) {
    %c0_i32 = arith.constant 0 : i32
    %c0_i32_0 = arith.constant 0 : i32
    return %arg0, %c0_i32 : i32, i32
  }
  func.func @transform_1(%arg0: i32) -> (i32, i32) {
    %c0_i32 = arith.constant 0 : i32
    %c0_i32_0 = arith.constant 0 : i32
    return %arg0, %c0_i32 : i32, i32
  }
  func.func @transform_2(%arg0: i32) -> (i32, i32) {
    %c0_i32 = arith.constant 0 : i32
    %c0_i32_0 = arith.constant 0 : i32
    %c0_i32_1 = arith.constant 0 : i32
    return %c0_i32, %c0_i32_0 : i32, i32
  }
  func.func @transform_3(%arg0: i32) -> (i32, i32) {
    %c0_i32 = arith.constant 0 : i32
    %c0_i32_0 = arith.constant 0 : i32
    %c0_i32_1 = arith.constant 0 : i32
    return %c0_i32, %c0_i32_0 : i32, i32
  }
  func.func @transform_4(%arg0: i32) -> (i32, i32) {
    %c0_i32 = arith.constant 0 : i32
    %c0_i32_0 = arith.constant 0 : i32
    %c0_i32_1 = arith.constant 0 : i32
    return %c0_i32, %c0_i32_0 : i32, i32
  }
  func.func @transform_5(%arg0: i32) -> (i32, i32) {
    %c0_i32 = arith.constant 0 : i32
    %c0_i32_0 = arith.constant 0 : i32
    return %arg0, %c0_i32 : i32, i32
  }
}

</mosaic_0001>

<bundles_post_ra>
// kernel: tpu_custom_call.1
= control target key start
LH: loop header
LB: loop body
LE: loop exit
PB: predicated region body
PF: predicated region fallthrough
CT: control target
= control target key end

     0   :  { %s1736_s0 = inlined_call_operand.hbm [shape: f32[16,128], index: 0, kind: input, shape index: {}]   ;;  %s1737_s1 = inlined_call_operand.hbm [shape: f32[16,128], index: 1, kind: input, shape index: {}]   ;;  %s1738_s2 = inlined_call_operand.hbm [shape: f32[128,384], index: 2, kind: input, shape index: {}]   ;;  %s1739_s3 = inlined_call_operand.hbm [shape: f32[128,384], index: 3, kind: input, shape index: {}]   ;;  %s1740_s4 = inlined_call_operand.vmem [shape: f32[4,128], index: 4, kind: input, shape index: {}]   ;;  %s1741_s5 = inlined_call_operand.hbm [shape: f32[16,128], index: 5, kind: output, shape index: {}]  }
   0x1   :  { %1746 = sst [smem:[#allocation16_spill]] %s1738_s2 }
   0x2   :  { %1747 = sst [smem:[#allocation17_spill]] %s1739_s3 }
   0x3   :  { %10 = vsyncpa [#allocation3], 0 }
   0x4   :  { %12 = vsyncpa [#allocation3 + $0x1], 0 }
   0x5   :  { %13 = vsyncpa [#allocation6], 0 }
   0x6   :  { %15 = vsyncpa [#allocation6 + $0x1], 0 }
   0x7   :  { %16 = vsyncpa [#allocation9], 0 }
   0x8   :  { %17 = vsyncpa [#allocation4], 0 }
   0x9   :  { %19 = vsyncpa [#allocation4 + $0x1], 0  ;;  %s1424_s18 = smov 0   ;;  %s1426_s19 = smov 0  }
   0xa   :  { %s1428_s20 = smov 0   ;;  %s1430_s21 = smov 0  }
   0xb LB: > { %s1445_s22 = sadd.s32 4294967295, %s1382_s21   ;;  %s858_s23 = sadd.s32 4294967294, %s1382_s21   ;;  %s1382_s21 = sphi %s1430_s21, %s1769_s21   ;;  %s1378_s20 = sphi %s1428_s20, %s1768_s20   ;;  %s1374_s19 = sphi %s1426_s19, %s1767_s19   ;;  %s1370_s18 = sphi %s1424_s18, %s1766_s18  }
   0xc   : > { %p45_p0 = scmp.ne.s32.totalorder %s1374_s19, %s1370_s18  ;;  %p1742_p1 = scmp.eq.s32.totalorder %s1445_s22, 0 }
   0xd   : > { %p164_p3 = scmp.eq.s32.totalorder %s858_s23, 1  ;;  %p859_p5 = scmp.ge.s32.totalorder %s1382_s21, 1 }
   0xe   : > { %p1454_p4 = por %p1742_p1, %p45_p0  ;;  %p171_p7 = scmp.lt.s32.totalorder %s1382_s21, 3 }
   0xf   : > { %p1459_p6 = por %p164_p3, %p45_p0  ;;  %s1384_s27 = smov [#allocation7]  }
  0x10   : > { %s1748_s24 = scalar_select %p1454_p4, 1, 0 }
  0x11   : > { %s1749_s25 = scalar_select %p1459_p6, 1, 0 }
  0x12   : > { %p1464_p8 = pnand %p859_p5, %p171_p7  ;;  %s183_s28 = sshll.u32 %s1384_s27, 4  ;;  %s1468_s28 = int_to_ptr.vmem [resolvable:$true] %s183_s28 }
  0x13   : > { %s1385_s30 = smov [#allocation8]   ;;  %s1752_s2 = sld [smem:[#allocation16_spill]] }
  0x14   : > { %s1750_s26 = scalar_select %p1464_p8, 1, 0 }
  0x15   : > { %p1115_p9 = pneg %p1464_p8  ;;  %s196_s6 = sshll.u32 %s1385_s30, 4  ;;  %s1479_s6 = int_to_ptr.vmem [resolvable:$true] %s196_s6 }
  0x17   : > { %p1475_p11 = pnand %p1115_p9, %p1742_p1 }
  0x19   : > { %s1188_s9 = scalar_lea.hbm %s1752_s2, 6144  ;;  %p1190_p13 = pneg %p1475_p11 }
  0x1a   : > { %p1189_p12 = scmp.ne.s32.totalorder %s1752_s2, %s1188_s9  ;;  %p1195_p5 = scmp.lt.u32.totalorder %s1188_s9, %s1752_s2 }
  0x1c   : > { %p1191_p0 = pnand %p1190_p13, %p1189_p12 }
  0x1e   : > { %p1192_p3 = pneg %p1191_p0 }
  0x20   : > { %p1197_p7 = pnand %p1195_p5, %p1192_p3 }
  0x22   : > { %1200 = shalt.err (!%p1197_p7)
}
  0x23   : > { %s1201_s14 = scalar_lea.vmem %s1468_s28, 6144  ;;  %p1209_p2 = scmp.lt.s32.totalorder %s1468_s28, %s1468_s28 }
  0x24   : > { %p1202_p9 = scmp.ne.s32.totalorder %s1468_s28, %s1201_s14  ;;  %p1210_p12 = scmp.lt.s32.totalorder %s1201_s14, %s1201_s14 }
  0x26   : > { %p1204_p10 = pnand %p1202_p9, %p1190_p13  ;;  %p1211_p0 = por %p1210_p12, %p1209_p2 }
  0x28   : > { %p1205_p1 = pneg %p1204_p10 }
  0x2a   : > { %p1212_p6 = pnand %p1211_p0, %p1205_p1 }
  0x2c   : > { %1215 = shalt.err (!%p1212_p6)
}
  0x2d   : > { %s1386_s15 = smov 384   ;;  %s1387_s16 = smov 24  }
  0x2e   : > { %1118 = dma.hbm_to_vmem [thread:$0]  (!%p1475_p11), %s1752_s2, 6144, %s1468_s28, [#allocation6], %s1386_s15, %s1386_s15, %s1387_s16  }
  0x2f   : > { %s1753_s3 = sld [smem:[#allocation17_spill]] }
  0x35   : > { %s1216_s7 = scalar_lea.hbm %s1753_s3, 6144 }
  0x36   : > { %p1217_p2 = scmp.ne.s32.totalorder %s1753_s3, %s1216_s7  ;;  %p1223_p10 = scmp.lt.u32.totalorder %s1216_s7, %s1753_s3 }
  0x38   : > { %p1219_p1 = pnand %p1217_p2, %p1190_p13 }
  0x3a   : > { %p1220_p6 = pneg %p1219_p1 }
  0x3c   : > { %p1225_p3 = pnand %p1223_p10, %p1220_p6 }
  0x3e   : > { %1228 = shalt.err (!%p1225_p3)
}
  0x3f   : > { %s1229_s28 = scalar_lea.vmem %s1479_s6, 6144  ;;  %p1237_p12 = scmp.lt.s32.totalorder %s1479_s6, %s1479_s6 }
  0x40   : > { %p1230_p5 = scmp.ne.s32.totalorder %s1479_s6, %s1229_s28  ;;  %p1238_p0 = scmp.lt.s32.totalorder %s1229_s28, %s1229_s28 }
  0x42   : > { %p1232_p7 = pnand %p1230_p5, %p1190_p13  ;;  %p1239_p2 = por %p1238_p0, %p1237_p12 }
  0x44   : > { %p1233_p9 = pneg %p1232_p7 }
  0x46   : > { %p1240_p1 = pnand %p1239_p2, %p1233_p9 }
  0x48   : > { %1243 = shalt.err (!%p1240_p1)
}
  0x49   : > { %1121 = dma.hbm_to_vmem [thread:$0]  (!%p1475_p11), %s1753_s3, 6144, %s1479_s6, [#allocation9], %s1386_s15, %s1386_s15, %s1387_s16  }
  0x4a   : > { %s1534_s14 = sadd.s32 1, %s1382_s21   ;;  %s32_s29 = sadd.s32 1, %s1378_s20 }
  0x4b   : > { %s29_s17 = ssub.s32 %s1382_s21, %s1534_s14  ;;  %p39_p13 = scmp.ne.s32.totalorder %s1378_s20, %s1374_s19 }
  0x4c   : > { %p30_p6 = scmp.eq.s32.totalorder %s29_s17, 0  ;;  %p40_p10 = scmp.eq.s32.totalorder %s1382_s21, 0 }
  0x4d   : > { %p1754_p3 = scmp.eq.s32.totalorder %s1445_s22, 1  ;;  %p1135_p7 = scmp.lt.s32.totalorder %s1382_s21, 2 }
  0x4e   : > { %s1550_s27 = scalar_select %p30_p6, %s1378_s20, %s32_s29  }
  0x4f   : > { %p1544_p5 = por %p1754_p3, %p39_p13  ;;  %p41_p9 = por %p40_p10, %p39_p13 }
  0x50   : > { %s213_s30 = sand.u32 1, %s1378_s20   ;;  %s864_s15 = sshll.u32 %s1382_s21, 7 }
  0x51   : > { %s1755_s23 = scalar_select %p1544_p5, 1, 0 }
  0x52   : > { %s1553_s6 = sshll.u32 %s213_s30, 3  ;;  %s1559_s8 = scalar_lea.hbm %s1736_s0, %s864_s15 }
  0x53   : > { %s217_s9 = scalar_lea.vmem [#allocation2], %s1553_s6  ;;  %p1564_p11 = pnand %p1135_p7, %p41_p9 }
  0x54   : > { %s224_s10 = sshll.u32 %s217_s9, 4  ;;  %s1571_s13 = scalar_lea.hbm %s1737_s1, %s864_s15  ;;  %s1562_s10 = int_to_ptr.vmem [resolvable:$true] %s224_s10 }
  0x55   : > { %s231_s29 = sand.u32 1, %s1382_s21   ;;  %s214_s17 = scalar_lea.sflag [#allocation3], %s213_s30 }
  0x56   : > { %s1244_s16 = scalar_lea.hbm %s1559_s8, 128  ;;  %p1246_p0 = pneg %p1564_p11 }
  0x57   : > { %p1245_p12 = scmp.ne.s32.totalorder %s1559_s8, %s1244_s16  ;;  %s1249_s2 = scalar_lea.hbm %s1736_s0, 256 }
  0x58   : > { %p1250_p13 = scmp.lt.u32.totalorder %s1559_s8, %s1736_s0  ;;  %p1251_p6 = scmp.lt.u32.totalorder %s1249_s2, %s1244_s16 }
  0x59   : > { %p1247_p2 = pnand %p1246_p0, %p1245_p12  ;;  %p1253_p3 = scmp.lt.u32.totalorder %s1244_s16, %s1559_s8 }
  0x5a   : > { %p1252_p10 = por %p1251_p6, %p1250_p13 }
  0x5b   : > { %p1248_p1 = pneg %p1247_p2 }
  0x5c   : > { %p1254_p7 = por %p1253_p3, %p1252_p10 }
  0x5e   : > { %p1255_p9 = pnand %p1254_p7, %p1248_p1 }
  0x60   : > { %1258 = shalt.err (!%p1255_p9)
}
  0x61   : > { %s1259_s30 = scalar_lea.vmem %s1562_s10, 128  ;;  %s1388_s15 = smov [#allocation2]  }
  0x62   : > { %p1260_p12 = scmp.ne.s32.totalorder %s1562_s10, %s1259_s30  ;;  %s1264_s12 = sshll.u32 %s1388_s15, 4  ;;  %s1265_s12 = int_to_ptr.vmem [resolvable:$false] %s1264_s12 }
  0x63   : > { %s1266_s3 = scalar_lea.vmem %s1265_s12, 256  ;;  %p1267_p4 = scmp.lt.s32.totalorder %s1562_s10, %s1265_s12 }
  0x64   : > { %p1262_p2 = pnand %p1260_p12, %p1246_p0  ;;  %p1268_p13 = scmp.lt.s32.totalorder %s1266_s3, %s1259_s30 }
  0x66   : > { %p1263_p5 = pneg %p1262_p2  ;;  %p1269_p6 = por %p1268_p13, %p1267_p4 }
  0x68   : > { %p1270_p10 = pnand %p1269_p6, %p1263_p5 }
  0x6a   : > { %1273 = shalt.err (!%p1270_p10)
}
  0x6b   : > { %1125 = dma.hbm_to_vmem [thread:$0]  (!%p1564_p11), %s1559_s8, 128, %s1562_s10, %s214_s17  }
  0x6c   : > { %s235_s2 = scalar_lea.vmem [#allocation5], %s1553_s6  ;;  %s232_s7 = scalar_lea.sflag [#allocation6], %s231_s29 }
  0x6d   : > { %s242_s16 = sshll.u32 %s235_s2, 4  ;;  %s1274_s9 = scalar_lea.hbm %s1571_s13, 128  ;;  %s243_s16 = int_to_ptr.vmem [resolvable:$true] %s242_s16 }
  0x6e   : > { %p1275_p4 = scmp.ne.s32.totalorder %s1571_s13, %s1274_s9  ;;  %s1279_s15 = scalar_lea.hbm %s1737_s1, 256 }
  0x6f   : > { %p1280_p3 = scmp.lt.u32.totalorder %s1571_s13, %s1737_s1  ;;  %p1281_p7 = scmp.lt.u32.totalorder %s1279_s15, %s1274_s9 }
  0x70   : > { %p1277_p5 = pnand %p1275_p4, %p1246_p0  ;;  %p1283_p12 = scmp.lt.u32.totalorder %s1274_s9, %s1571_s13 }
  0x71   : > { %p1282_p9 = por %p1281_p7, %p1280_p3 }
  0x72   : > { %p1278_p1 = pneg %p1277_p5 }
  0x73   : > { %p1284_p2 = por %p1283_p12, %p1282_p9 }
  0x75   : > { %p1285_p13 = pnand %p1284_p2, %p1278_p1 }
  0x77   : > { %1288 = shalt.err (!%p1285_p13)
}
  0x78   : > { %s1289_s6 = scalar_lea.vmem %s243_s16, 128  ;;  %s1389_s8 = smov [#allocation5]  }
  0x79   : > { %p1290_p6 = scmp.ne.s32.totalorder %s243_s16, %s1289_s6  ;;  %s1294_s10 = sshll.u32 %s1389_s8, 4  ;;  %s1295_s10 = int_to_ptr.vmem [resolvable:$false] %s1294_s10 }
  0x7a   : > { %s1296_s29 = scalar_lea.vmem %s1295_s10, 256  ;;  %p1297_p5 = scmp.lt.s32.totalorder %s243_s16, %s1295_s10 }
  0x7b   : > { %p1292_p10 = pnand %p1290_p6, %p1246_p0  ;;  %p1298_p8 = scmp.lt.s32.totalorder %s1296_s29, %s1289_s6 }
  0x7d   : > { %p1293_p4 = pneg %p1292_p10  ;;  %p1299_p3 = por %p1298_p8, %p1297_p5 }
  0x7f   : > { %p1300_p7 = pnand %p1299_p3, %p1293_p4 }
  0x81   : > { %1303 = shalt.err (!%p1300_p7)
}
  0x82   : > { %1128 = dma.hbm_to_vmem [thread:$0]  (!%p1564_p11), %s1571_s13, 128, %s243_s16, %s232_s7  }
  0x83   : > { %p1757_p1 = scmp.ne.s32.totalorder %s1750_s26, 0 }
  0x84   : > { %s1624_s17 = sand.u32 (!%p1757_p1), 1, %s1374_s19   ;;  %p1758_p8 = scmp.ne.s32.totalorder (!%p1757_p1), %s1748_s24, 0 }
  0x85   : > { %251 = sbr.rel (%p1757_p1) target bundleno = 492 (0x1ec), region = 40  ;;  %s1627_s2 = sshll.u32 (!%p1757_p1), %s1624_s17, 3 }
  0x86   : > { %s254_s9 = scalar_lea.sflag (!%p1757_p1), [#allocation3], %s1624_s17  ;;  %s257_s28 = scalar_lea.vmem (!%p1757_p1), [#allocation2], %s1627_s2 }
  0x8c   : > { %1349 = dma.done.wait (%p1758_p8), %s254_s9, 128  }
  0x8d   : > { %1351 = vsyncadd (%p1758_p8), %s254_s9, 4294967168  ;;  %s262_s26 = sand.u32 1, %s1445_s22   ;;  %s266_s13 = scalar_lea.vmem [#allocation5], %s1627_s2 }
  0x8e   : > { %s263_s11 = scalar_lea.sflag [#allocation6], %s262_s26 }
  0x8f   : > { %1353 = dma.done.wait (%p1758_p8), %s263_s11, 128  }
  0x90   : > { %1355 = vsyncadd (%p1758_p8), %s263_s11, 4294967168  ;;  %p1759_p11 = scmp.eq.s32.totalorder %s1445_s22, 0 }
  0x92   : > { %1357 = dma.done.wait (%p1759_p11), [#allocation6], 6144   ;;  %p1760_p0 = pmov %p1759_p11 }
  0x94   : > { %1359 = vsyncadd (%p1760_p0), [#allocation6], 4294961152  ;;  %p1761_p9 = pmov %p1760_p0 }
  0x95   : > { %p1762_p12 = pmov %p1760_p0 }
  0x96   : > { %1361 = dma.done.wait (%p1761_p9), [#allocation9], 6144  }
  0x97   : > { %1363 = vsyncadd (%p1762_p12), [#allocation9], 4294961152  ;;  %v1390_v0 = vmov 0.0|0.0   ;;  %v1391_v1 = vmov 0.0   ;;  %vm1392_vm0 = vmmov 0   ;;  %v309_v2 = vld [vmem:[#allocation7 + $0x8] sm:$0xff] }
  0x98   : > { %1019 = vmatprep.subr.bf16.mxu1 %v1390_v0  ;;  %420 = vmatprep.mubr.f32.mxu0 %v1391_v1  ;;  %v312_v3 = vld [vmem:[#allocation7 + $0x20] sm:$0xff]  ;;  %v311_v6 = vld [vmem:[#allocation7 + $0x18] sm:$0xff]  ;;  %v318_v8 = vld [vmem:[#allocation7 + $0x50] sm:$0xff]  ;;  %s880_s8 = sshll.u32 %s1445_s22, 7  ;;  %s305_s10 = scalar_lea.vmem [#allocation10], %s1627_s2 }
  0x99   : > { %949 = vmatprep.mubr.msk.f32.mxu1 %vm1392_vm0, %v1391_v1  ;;  %v308_v4 = vld [vmem:[#allocation7] sm:$0xff]  ;;  %v987_v5 = vpack.c.bf16 %v312_v3, %v309_v2  ;;  %v315_v7 = vld [vmem:[#allocation7 + $0x38] sm:$0xff]  ;;  %v314_v11 = vld [vmem:[#allocation7 + $0x30] sm:$0xff]  ;;  %s746_s29 = sshll.u32 %s305_s10, 4  ;;  %s1692_s26 = scalar_lea.hbm %s1741_s5, %s880_s8  ;;  %s1694_s29 = int_to_ptr.vmem [resolvable:$true] %s746_s29 }
  0x9a   : > { %v989_v9 = vpack.c.bf16 %v311_v6, %v308_v4  ;;  %v991_v10 = vpack.c.bf16 %v318_v8, %v315_v7  ;;  %v317_v12 = vld [vmem:[#allocation7 + $0x48] sm:$0xff]  ;;  %v324_v14 = vld [vmem:[#allocation7 + $0x80] sm:$0xff]  ;;  %v323_v18 = vld [vmem:[#allocation7 + $0x78] sm:$0xff]  ;;  %s733_s11 = scalar_lea.sflag [#allocation4], %s1624_s17  ;;  %p1763_p13 = scmp.ne.s32.totalorder %s1755_s23, 0 }
  0x9b   : > { %v321_v13 = vld [vmem:[#allocation7 + $0x68] sm:$0xff]  ;;  %988 = vmatprep.subr.bf16.mxu0 %v987_v5  ;;  %v993_v15 = vpack.c.bf16 %v317_v12, %v314_v11  ;;  %v320_v17 = vld [vmem:[#allocation7 + $0x60] sm:$0xff]  ;;  %v327_v19 = vld [vmem:[#allocation7 + $0x98] sm:$0xff]  ;;  %s1393_s22 = smov [#allocation10]  }
  0x9c   : > { %990 = vmatpush1.bf16.msra.mxu0 %v989_v9  ;;  %v995_v16 = vpack.c.bf16 %v324_v14, %v321_v13  ;;  %v330_v20 = vld [vmem:[#allocation7 + $0xb0] sm:$0xff]  ;;  %v997_v21 = vpack.c.bf16 %v323_v18, %v320_v17  ;;  %v329_v24 = vld [vmem:[#allocation7 + $0xa8] sm:$0xff]  ;;  %v336_v28 = vld [vmem:[#allocation7 + $0xe0] sm:$0xff]  ;;  %s1308_s2 = sshll.u32 %s1393_s22, 4  ;;  %s1309_s2 = int_to_ptr.vmem [resolvable:$false] %s1308_s2 }
  0x9d   : > { %992 = vmatprep.subr.bf16.mxu0 %v991_v10  ;;  %v326_v22 = vld [vmem:[#allocation7 + $0x90] sm:$0xff]  ;;  %v999_v23 = vpack.c.bf16 %v330_v20, %v327_v19  ;;  %v313_v26 = vld [vmem:[#allocation7 + $0x28] sm:$0xff]  ;;  %v316_v30 = vld [vmem:[#allocation7 + $0x40] sm:$0xff]  ;;  %s1310_s24 = scalar_lea.vmem %s1309_s2, 256  ;;  %p1311_p4 = scmp.lt.s32.totalorder %s1694_s29, %s1309_s2 }
  0x9e   : > { %v310_v25 = vld [vmem:[#allocation7 + $0x10] sm:$0xff]  ;;  %v333_v27 = vld [vmem:[#allocation7 + $0xc8] sm:$0xff]  ;;  %v319_v31 = vld [vmem:[#allocation7 + $0x58] sm:$0xff]  ;;  %v1001_v32 = vpack.c.bf16 %v329_v24, %v326_v22 }
  0x9f   : > { %v1020_v29 = vpack.c.bf16 %v313_v26, %v310_v25  ;;  %v1023_v33 = vpack.c.bf16 %v319_v31, %v316_v30  ;;  %v1003_v34 = vpack.c.bf16 %v336_v28, %v333_v27  ;;  %v332_v35 = vld [vmem:[#allocation7 + $0xc0] sm:$0xff]  ;;  %v335_v36 = vld [vmem:[#allocation7 + $0xd8] sm:$0xff]  ;;  %v322_v37 = vld [vmem:[#allocation7 + $0x70] sm:$0xff] }
  0xa0   : > { %994 = vmatpush1.bf16.msra.mxu0 %v993_v15  ;;  %v339_v38 = vld [vmem:[#allocation7 + $0xf8] sm:$0xff]  ;;  %v342_v39 = vld [vmem:[#allocation7 + $0x110] sm:$0xff]  ;;  %v325_v40 = vld [vmem:[#allocation7 + $0x88] sm:$0xff]  ;;  %v1005_v41 = vpack.c.bf16 %v335_v36, %v332_v35 }
  0xa1   : > { %996 = vmatprep.subr.bf16.mxu0 %v995_v16  ;;  %1021 = vmatpush3.bf16.msra.mxu1 %v1020_v29  ;;  %v338_v42 = vld [vmem:[#allocation7 + $0xf0] sm:$0xff]  ;;  %v1026_v43 = vpack.c.bf16 %v325_v40, %v322_v37  ;;  %v1007_v44 = vpack.c.bf16 %v342_v39, %v339_v38  ;;  %v341_v45 = vld [vmem:[#allocation7 + $0x108] sm:$0xff]  ;;  %v328_v46 = vld [vmem:[#allocation7 + $0xa0] sm:$0xff] }
  0xa2   : > { %1022 = vmatprep.subr.bf16.mxu1 %v1390_v0  ;;  %v331_v47 = vld [vmem:[#allocation7 + $0xb8] sm:$0xff]  ;;  %v345_v48 = vld [vmem:[#allocation7 + $0x128] sm:$0xff]  ;;  %v348_v49 = vld [vmem:[#allocation7 + $0x140] sm:$0xff]  ;;  %v1009_v50 = vpack.c.bf16 %v341_v45, %v338_v42 }
  0xa3   : > { %v344_v51 = vld [vmem:[#allocation7 + $0x120] sm:$0xff]  ;;  %v1029_v52 = vpack.c.bf16 %v331_v47, %v328_v46  ;;  %v1011_v53 = vpack.c.bf16 %v348_v49, %v345_v48  ;;  %v347_v54 = vld [vmem:[#allocation7 + $0x138] sm:$0xff]  ;;  %v334_v55 = vld [vmem:[#allocation7 + $0xd0] sm:$0xff] }
  0xa4   : > { %998 = vmatpush1.bf16.msra.mxu0 %v997_v21  ;;  %v337_v56 = vld [vmem:[#allocation7 + $0xe8] sm:$0xff]  ;;  %v351_v57 = vld [vmem:[#allocation7 + $0x158] sm:$0xff]  ;;  %v354_v58 = vld [vmem:[#allocation7 + $0x170] sm:$0xff]  ;;  %v1013_v59 = vpack.c.bf16 %v347_v54, %v344_v51 }
  0xa5   : > { %1000 = vmatprep.subr.bf16.mxu0 %v999_v23  ;;  %1024 = vmatpush3.bf16.msra.mxu1 %v1023_v33  ;;  %v350_v60 = vld [vmem:[#allocation7 + $0x150] sm:$0xff]  ;;  %v1032_v61 = vpack.c.bf16 %v337_v56, %v334_v55  ;;  %v1015_v62 = vpack.c.bf16 %v354_v58, %v351_v57  ;;  %v353_v63 = vld [vmem:[#allocation7 + $0x168] sm:$0xff]  ;;  %v340_v2 = vld [vmem:[#allocation7 + $0x100] sm:$0xff] }
  0xa6   : > { %1025 = vmatprep.subr.bf16.mxu1 %v1390_v0  ;;  %v343_v3 = vld [vmem:[#allocation7 + $0x118] sm:$0xff]  ;;  %v498_v4 = vld [vmem:[#allocation8 + $0x8] sm:$0xff]  ;;  %v501_v5 = vld [vmem:[#allocation8 + $0x20] sm:$0xff]  ;;  %v1017_v6 = vpack.c.bf16 %v353_v63, %v350_v60 }
  0xa7   : > { %v497_v7 = vld [vmem:[#allocation8] sm:$0xff]  ;;  %v1035_v8 = vpack.c.bf16 %v343_v3, %v340_v2  ;;  %v1043_v9 = vpack.c.bf16 %v501_v5, %v498_v4  ;;  %v500_v10 = vld [vmem:[#allocation8 + $0x18] sm:$0xff]  ;;  %v346_v11 = vld [vmem:[#allocation7 + $0x130] sm:$0xff] }
  0xa8   : > { %1002 = vmatpush1.bf16.msra.mxu0 %v1001_v32  ;;  %v349_v12 = vld [vmem:[#allocation7 + $0x148] sm:$0xff]  ;;  %v504_v13 = vld [vmem:[#allocation8 + $0x38] sm:$0xff]  ;;  %v507_v14 = vld [vmem:[#allocation8 + $0x50] sm:$0xff]  ;;  %v1045_v16 = vpack.c.bf16 %v500_v10, %v497_v7 }
  0xa9   : > { %1004 = vmatprep.subr.bf16.mxu0 %v1003_v34  ;;  %1027 = vmatpush3.bf16.msra.mxu1 %v1026_v43  ;;  %v306_v15 = vld [vmem:[%s257_s28] sm:$0xff]  ;;  %v503_v17 = vld [vmem:[#allocation8 + $0x30] sm:$0xff]  ;;  %v1038_v18 = vpack.c.bf16 %v349_v12, %v346_v11  ;;  %v1047_v19 = vpack.c.bf16 %v507_v14, %v504_v13  ;;  %v355_v22 = vld [vmem:[#allocation7 + $0x178] sm:$0xff] }
  0xaa   : > { %1028 = vmatprep.subr.bf16.mxu1 %v1390_v0  ;;  %v506_v20 = vld [vmem:[#allocation8 + $0x48] sm:$0xff]  ;;  %v352_v21 = vld [vmem:[#allocation7 + $0x160] sm:$0xff]  ;;  %v512_v29 = vld [vmem:[#allocation8 + $0x78] sm:$0xff] }
  0xab   : > { %v510_v23 = vld [vmem:[#allocation8 + $0x68] sm:$0xff]  ;;  %v513_v24 = vld [vmem:[#allocation8 + $0x80] sm:$0xff]  ;;  %v1049_v25 = vpack.c.bf16 %v506_v20, %v503_v17  ;;  %v1041_v27 = vpack.c.bf16 %v355_v22, %v352_v21  ;;  %v499_v30 = vld [vmem:[#allocation8 + $0x10] sm:$0xff] }
  0xac   : > { %1006 = vmatpush1.bf16.msra.mxu0 %v1005_v41  ;;  %v509_v26 = vld [vmem:[#allocation8 + $0x60] sm:$0xff]  ;;  %v1051_v28 = vpack.c.bf16 %v513_v24, %v510_v23  ;;  %v502_v31 = vld [vmem:[#allocation8 + $0x28] sm:$0xff]  ;;  %v516_v32 = vld [vmem:[#allocation8 + $0x98] sm:$0xff] }
  0xad   : > { %1008 = vmatprep.subr.bf16.mxu0 %v1007_v44  ;;  %1030 = vmatpush3.bf16.msra.mxu1 %v1029_v52  ;;  %v519_v33 = vld [vmem:[#allocation8 + $0xb0] sm:$0xff]  ;;  %v1053_v34 = vpack.c.bf16 %v512_v29, %v509_v26  ;;  %v1076_v36 = vpack.c.bf16 %v502_v31, %v499_v30  ;;  %v518_v38 = vld [vmem:[#allocation8 + $0xa8] sm:$0xff]  ;;  %v505_v39 = vld [vmem:[#allocation8 + $0x40] sm:$0xff] }
  0xae   : > { %1031 = vmatprep.subr.bf16.mxu1 %v1390_v0  ;;  %v515_v35 = vld [vmem:[#allocation8 + $0x90] sm:$0xff]  ;;  %v1055_v37 = vpack.c.bf16 %v519_v33, %v516_v32  ;;  %v508_v40 = vld [vmem:[#allocation8 + $0x58] sm:$0xff]  ;;  %v522_v41 = vld [vmem:[#allocation8 + $0xc8] sm:$0xff] }
  0xaf   : > { %v525_v42 = vld [vmem:[#allocation8 + $0xe0] sm:$0xff]  ;;  %v1057_v43 = vpack.c.bf16 %v518_v38, %v515_v35  ;;  %v1079_v45 = vpack.c.bf16 %v508_v40, %v505_v39  ;;  %v524_v47 = vld [vmem:[#allocation8 + $0xd8] sm:$0xff]  ;;  %v511_v48 = vld [vmem:[#allocation8 + $0x70] sm:$0xff] }
  0xb0   : > { %1010 = vmatpush1.bf16.msra.mxu0 %v1009_v50  ;;  %v521_v44 = vld [vmem:[#allocation8 + $0xc0] sm:$0xff]  ;;  %v1059_v46 = vpack.c.bf16 %v525_v42, %v522_v41  ;;  %v514_v49 = vld [vmem:[#allocation8 + $0x88] sm:$0xff]  ;;  %v528_v50 = vld [vmem:[#allocation8 + $0xf8] sm:$0xff] }
  0xb1   : > { %1012 = vmatprep.subr.bf16.mxu0 %v1011_v53  ;;  %1033 = vmatpush3.bf16.msra.mxu1 %v1032_v61  ;;  %v531_v51 = vld [vmem:[#allocation8 + $0x110] sm:$0xff]  ;;  %v1061_v52 = vpack.c.bf16 %v524_v47, %v521_v44  ;;  %v1082_v54 = vpack.c.bf16 %v514_v49, %v511_v48  ;;  %v530_v56 = vld [vmem:[#allocation8 + $0x108] sm:$0xff]  ;;  %v517_v57 = vld [vmem:[#allocation8 + $0xa0] sm:$0xff] }
  0xb2   : > { %1034 = vmatprep.subr.bf16.mxu1 %v1390_v0  ;;  %v527_v53 = vld [vmem:[#allocation8 + $0xf0] sm:$0xff]  ;;  %v1063_v55 = vpack.c.bf16 %v531_v51, %v528_v50  ;;  %v520_v58 = vld [vmem:[#allocation8 + $0xb8] sm:$0xff]  ;;  %v537_v60 = vld [vmem:[#allocation8 + $0x140] sm:$0xff] }
  0xb3   : > { %v1065_v61 = vpack.c.bf16 %v530_v56, %v527_v53  ;;  %v1085_v63 = vpack.c.bf16 %v520_v58, %v517_v57  ;;  %v536_v2 = vld [vmem:[#allocation8 + $0x138] sm:$0xff]  ;;  %v523_v3 = vld [vmem:[#allocation8 + $0xd0] sm:$0xff]  ;;  %v526_v4 = vld [vmem:[#allocation8 + $0xe8] sm:$0xff] }
  0xb4   : > { %1014 = vmatpush1.bf16.msra.mxu0 %v1013_v59  ;;  %v534_v59 = vld [vmem:[#allocation8 + $0x128] sm:$0xff]  ;;  %v540_v5 = vld [vmem:[#allocation8 + $0x158] sm:$0xff]  ;;  %v529_v12 = vld [vmem:[#allocation8 + $0x100] sm:$0xff] }
  0xb5   : > { %1016 = vmatprep.subr.bf16.mxu0 %v1015_v62  ;;  %1036 = vmatpush3.bf16.msra.mxu1 %v1035_v8  ;;  %v533_v62 = vld [vmem:[#allocation8 + $0x120] sm:$0xff]  ;;  %v539_v8 = vld [vmem:[#allocation8 + $0x150] sm:$0xff]  ;;  %v542_v11 = vld [vmem:[#allocation8 + $0x168] sm:$0xff] }
  0xb6   : > { %1037 = vmatprep.subr.bf16.mxu1 %v1390_v0  ;;  %v1069_v7 = vpack.c.bf16 %v536_v2, %v533_v62  ;;  %v532_v13 = vld [vmem:[#allocation8 + $0x118] sm:$0xff]  ;;  %v1073_v14 = vpack.c.bf16 %v542_v11, %v539_v8  ;;  %v538_v17 = vld [vmem:[#allocation8 + $0x148] sm:$0xff]  ;;  %v541_v20 = vld [vmem:[#allocation8 + $0x160] sm:$0xff] }
  0xb7   : > { %v544_v21 = vld [vmem:[#allocation8 + $0x178] sm:$0xff]  ;;  %v875_v29 = vld [vmem:[%s1740_s4 + $0x1] ss:$0 sm:$0xff]  ;;  %v877_v40 = vld [vmem:[%s1740_s4 + $0x2] ss:$0 sm:$0xff] }
  0xb8   : > { %1018 = vmatpush1.bf16.msra.mxu0 %v1017_v6  ;;  %v543_v6 = vld [vmem:[#allocation8 + $0x170] sm:$0xff]  ;;  %v1097_v22 = vpack.c.bf16 %v544_v21, %v541_v20 }
  0xb9   : > { %1044 = vmatprep.subr.bf16.mxu0 %v1043_v9  ;;  %1039 = vmatpush3.bf16.msra.mxu1 %v1038_v18  ;;  %v1088_v9 = vpack.c.bf16 %v526_v4, %v523_v3  ;;  %v1071_v10 = vpack.c.bf16 %v543_v6, %v540_v5  ;;  %v307_v18 = vld [vmem:[%s266_s13] sm:$0xff]  ;;  %s1304_s13 = scalar_lea.vmem %s1694_s29, 128 }
  0xba   : > { %1040 = vmatprep.subr.bf16.mxu1 %v1390_v0  ;;  %p1305_p2 = scmp.ne.s32.totalorder %s1694_s29, %s1304_s13  ;;  %p1312_p5 = scmp.lt.s32.totalorder %s1310_s24, %s1304_s13 }
  0xbb   : > { %421 = vmatmul.mubr.f32.vlgmr.msra.gmra.mrb[0].mxu0 %v306_v15 }
  0xbc   : > { %1046 = vmatpush1.bf16.msra.mxu0 %v1045_v16  ;;  %609 = vmatprep.mubr.f32.mxu0 %v1391_v1  ;;  %v535_v16 = vld [vmem:[#allocation8 + $0x130] sm:$0xff]  ;;  %p1306_p6 = pnand %p1305_p2, %p1763_p13  ;;  %p1313_p3 = por %p1312_p5, %p1311_p4 }
  0xbd   : > { %1048 = vmatprep.subr.bf16.mxu0 %v1047_v19  ;;  %1042 = vmatpush3.bf16.msra.mxu1 %v1041_v27  ;;  %v1094_v19 = vpack.c.bf16 %v538_v17, %v535_v16 }
  0xbe   : > { %1075 = vmatprep.subr.bf16.mxu1 %v1390_v0  ;;  %p1307_p10 = pneg %p1306_p6 }
  0xc0   : > { %1050 = vmatpush1.bf16.msra.mxu0 %v1049_v25  ;;  %950 = vmatmul.mubr.f32.vlgmr.msra.gmra.mrb[0].mxu1 %v306_v15  ;;  %v1091_v15 = vpack.c.bf16 %v532_v13, %v529_v12  ;;  %v873_v25 = vld [vmem:[%s1740_s4] ss:$0 sm:$0xff]  ;;  %p1314_p7 = pnand %p1313_p3, %p1307_p10 }
  0xc1   : > { %1052 = vmatprep.subr.bf16.mxu0 %v1051_v28  ;;  %1077 = vmatpush3.bf16.msra.mxu1 %v1076_v36 }
  0xc2   : > { %1078 = vmatprep.subr.bf16.mxu1 %v1390_v0  ;;  %984 = vmatprep.mubr.msk.f32.mxu1 %vm1392_vm0, %v1391_v1  ;;  %v1067_v1 = vpack.c.bf16 %v537_v60, %v534_v59 }
  0xc4   : > { %1054 = vmatpush1.bf16.msra.mxu0 %v1053_v34 }
  0xc5   : > { %1056 = vmatprep.subr.bf16.mxu0 %v1055_v37  ;;  %1080 = vmatpush3.bf16.msra.mxu1 %v1079_v45  ;;  %v878_v37 = vld [vmem:[%s1740_s4 + $0x3] ss:$0 sm:$0xff] }
  0xc6   : > { %1081 = vmatprep.subr.bf16.mxu1 %v1390_v0 }
  0xc8   : > { %1058 = vmatpush1.bf16.msra.mxu0 %v1057_v43 }
  0xc9   : > { %1060 = vmatprep.subr.bf16.mxu0 %v1059_v46  ;;  %1083 = vmatpush3.bf16.msra.mxu1 %v1082_v54 }
  0xca   : > { %1084 = vmatprep.subr.bf16.mxu1 %v1390_v0 }
  0xcc   : > { %1062 = vmatpush1.bf16.msra.mxu0 %v1061_v52 }
  0xcd   : > { %1064 = vmatprep.subr.bf16.mxu0 %v1063_v55  ;;  %1086 = vmatpush3.bf16.msra.mxu1 %v1085_v63 }
  0xce   : > { %1087 = vmatprep.subr.bf16.mxu1 %v1390_v0 }
  0xd0   : > { %1066 = vmatpush1.bf16.msra.mxu0 %v1065_v61 }
  0xd1   : > { %1068 = vmatprep.subr.bf16.mxu0 %v1067_v1  ;;  %1089 = vmatpush3.bf16.msra.mxu1 %v1088_v9 }
  0xd2   : > { %1090 = vmatprep.subr.bf16.mxu1 %v1390_v0 }
  0xd4   : > { %1070 = vmatpush1.bf16.msra.mxu0 %v1069_v7 }
  0xd5   : > { %1072 = vmatprep.subr.bf16.mxu0 %v1071_v10  ;;  %1092 = vmatpush3.bf16.msra.mxu1 %v1091_v15 }
  0xd6   : > { %1093 = vmatprep.subr.bf16.mxu1 %v1390_v0 }
  0xd8   : > { %1074 = vmatpush1.bf16.msra.mxu0 %v1073_v14 }
  0xd9   : > { %1095 = vmatpush3.bf16.msra.mxu1 %v1094_v19 }
  0xda   : > { %1096 = vmatprep.subr.bf16.mxu1 %v1390_v0 }
  0xdb   : > { %610 = vmatmul.mubr.f32.vlgmr.msra.gmra.mrb[0].mxu0 %v307_v18 }
  0xdd   : > { %1098 = vmatpush3.bf16.msra.mxu1 %v1097_v22 }
  0xe0   : > { %985 = vmatmul.mubr.f32.vlgmr.msra.gmra.mrb[2].mxu1 %v307_v18 }
 0x193   : > { %v493_v23 = vpop.f32.mrb[0].mxu1 }
 0x194   : > { %v951_v24 = vpop.f32.mrb[1].mxu1  ;;  %v718_v42 = vadd.f32 %v877_v40, %v493_v23 }
 0x1ae   : > { %v611_v26 = vpop.f32.mrb[0].mxu0 }
 0x1af   : > { %v695_v27 = vadd.f32 %v873_v25, %v611_v26  ;;  %v613_v28 = vpop.f32.mrb[1].mxu0 }
 0x1b0   : > { %v707_v31 = vadd.f32 %v875_v29, %v613_v28 }
 0x1b1   : > { %v874_v30 = vmul.f32 -1.442695, %v695_v27 }
 0x1b2   : > { %v876_v32 = vmul.f32 -1.442695, %v707_v31 }
 0x1b3   : > { %1178 = vpow2.f32 %v874_v30  ;;  %v682_v0 = vpop.f32.mrb[2].mxu1 }
 0x1b4   : > { %v986_v33 = vpop.f32.mrb[3].mxu1  ;;  %1180 = vpow2.f32 %v876_v32  ;;  %v723_v39 = vadd.f32 %v878_v37, %v682_v0 }
 0x1bd   : > { %v1179_v34 = vpop.eup %1178 }
 0x1be   : > { %v699_v35 = vadd.f32 1.0, %v1179_v34  ;;  %v1181_v36 = vpop.eup %1180 }
 0x1bf   : > { %v711_v38 = vadd.f32 1.0, %v1181_v36 }
 0x1c0   : > { %1182 = vrcp.f32 %v699_v35 }
 0x1c1   : > { %1184 = vrcp.f32 %v711_v38 }
 0x1ca   : > { %v1183_v41 = vpop.eup %1182 }
 0x1cb   : > { %v724_v43 = vmul.f32 %v1183_v41, %v723_v39  ;;  %v1185_v45 = vpop.eup %1184 }
 0x1cc   : > { %v727_v46 = vsub.f32 1.0, %v1185_v45  ;;  %v729_v49 = vmul.f32 %v1185_v45, %v307_v18 }
 0x1cd   : > { %v725_v44 = vadd.f32 %v724_v43, %v718_v42 }
 0x1cf   : > { %1186 = vtanh.f32 %v725_v44 }
 0x1d9   : > { %v1187_v47 = vpop.eup %1186 }
 0x1da   : > { %v728_v48 = vmul.f32 %v1187_v47, %v727_v46 }
 0x1dc   : > { %v730_v50 = vadd.f32 %v729_v49, %v728_v48 }
 0x1de   : > { %731 = vst [vmem:[%s305_s10] sm:$0xff] %v730_v50 }
 0x1df   : > { %1317 = shalt.err (!%p1314_p7)
}
 0x1e0   : > { %s1318_s17 = scalar_lea.hbm %s1692_s26, 128  ;;  %s1322_s30 = scalar_lea.hbm %s1741_s5, 256 }
 0x1e1   : > { %p1319_p1 = scmp.ne.s32.totalorder %s1692_s26, %s1318_s17  ;;  %p1323_p0 = scmp.lt.u32.totalorder %s1692_s26, %s1741_s5 }
 0x1e2   : > { %p1324_p9 = scmp.lt.u32.totalorder %s1322_s30, %s1318_s17  ;;  %p1326_p2 = scmp.lt.u32.totalorder %s1318_s17, %s1692_s26 }
 0x1e3   : > { %p1320_p8 = pnand %p1319_p1, %p1763_p13 }
 0x1e4   : > { %p1325_p12 = por %p1324_p9, %p1323_p0 }
 0x1e5   : > { %p1321_p11 = pneg %p1320_p8 }
 0x1e6   : > { %p1327_p6 = por %p1326_p2, %p1325_p12 }
 0x1e8   : > { %p1328_p10 = pnand %p1327_p6, %p1321_p11 }
 0x1ea   : > { %1331 = shalt.err (!%p1328_p10)
}
 0x1eb   : > { %1113 = dma.vmem_to_hbm [thread:$0]  (%p1763_p13), %s1694_s29, 128, %s1692_s26, %s733_s11  }
 0x1ec PF: > { %s758_s3 = sand.u32 1, %s1370_s18   ;;  %p1764_p4 = scmp.ne.s32.totalorder %s1749_s25, 0 }
 0x1ed   : > { %p1765_p5 = scmp.ge.s32.totalorder %s1382_s21, 2  ;;  %s759_s6 = scalar_lea.sflag [#allocation4], %s758_s3 }
 0x1ef   : > { %p1130_p3 = pnand %p1765_p5, %p1764_p4 }
 0x1f1   : > { %1365 = dma.done.wait (!%p1130_p3), %s759_s6, 128  }
 0x1f2   : > { %1367 = vsyncadd (!%p1130_p3), %s759_s6, 4294967168  ;;  %p22_p7 = scmp.ge.s32.totalorder %s1534_s14, 4   ;;  %s1766_s18 = smov %s1374_s19 }
 0x1f3   : > { %s1767_s19 = smov %s1378_s20  ;;  %s1768_s20 = smov %s1550_s27 }
 0x1f4   : > { %s1769_s21 = smov %s1534_s14  ;;  %24 = sbr.rel (!%p22_p7) target bundleno = 11 (0xb), region = 106 }
 0x1fb   :  { %764 = vsyncpa [#allocation3], 1 }
 0x1fc   :  { %766 = vsyncpa [#allocation3 + $0x1], 1 }
 0x1fd   :  { %767 = vsyncpa [#allocation6], 1 }
 0x1fe   :  { %769 = vsyncpa [#allocation6 + $0x1], 1 }
 0x1ff   :  { %770 = vsyncpa [#allocation9], 1 }
 0x200   :  { %771 = vsyncpa [#allocation4], 1 }
 0x201   :  { %773 = vsyncpa [#allocation4 + $0x1], 1 }

// kernel: tpu_custom_call.1
= control target key start
LH: loop header
LB: loop body
LE: loop exit
PB: predicated region body
PF: predicated region fallthrough
CT: control target
= control target key end

     0   :  { %s1736_s0 = inlined_call_operand.hbm [shape: f32[16,128], index: 0, kind: input, shape index: {}]   ;;  %s1737_s1 = inlined_call_operand.hbm [shape: f32[16,128], index: 1, kind: input, shape index: {}]   ;;  %s1738_s2 = inlined_call_operand.hbm [shape: f32[128,384], index: 2, kind: input, shape index: {}]   ;;  %s1739_s3 = inlined_call_operand.hbm [shape: f32[128,384], index: 3, kind: input, shape index: {}]   ;;  %s1740_s4 = inlined_call_operand.vmem [shape: f32[4,128], index: 4, kind: input, shape index: {}]   ;;  %s1741_s5 = inlined_call_operand.hbm [shape: f32[16,128], index: 5, kind: output, shape index: {}]  }
   0x1   :  { %1746 = sst [smem:[#allocation16_spill]] %s1738_s2 }
   0x2   :  { %1747 = sst [smem:[#allocation17_spill]] %s1739_s3 }
   0x3   :  { %10 = vsyncpa [#allocation3], 0 }
   0x4   :  { %12 = vsyncpa [#allocation3 + $0x1], 0 }
   0x5   :  { %13 = vsyncpa [#allocation6], 0 }
   0x6   :  { %15 = vsyncpa [#allocation6 + $0x1], 0 }
   0x7   :  { %16 = vsyncpa [#allocation9], 0 }
   0x8   :  { %17 = vsyncpa [#allocation4], 0 }
   0x9   :  { %19 = vsyncpa [#allocation4 + $0x1], 0  ;;  %s1424_s18 = smov 0   ;;  %s1426_s19 = smov 0  }
   0xa   :  { %s1428_s20 = smov 0   ;;  %s1430_s21 = smov 0  }
   0xb LB: > { %s1445_s22 = sadd.s32 4294967295, %s1382_s21   ;;  %s858_s23 = sadd.s32 4294967294, %s1382_s21   ;;  %s1382_s21 = sphi %s1430_s21, %s1769_s21   ;;  %s1378_s20 = sphi %s1428_s20, %s1768_s20   ;;  %s1374_s19 = sphi %s1426_s19, %s1767_s19   ;;  %s1370_s18 = sphi %s1424_s18, %s1766_s18  }
   0xc   : > { %p45_p0 = scmp.ne.s32.totalorder %s1374_s19, %s1370_s18  ;;  %p1742_p1 = scmp.eq.s32.totalorder %s1445_s22, 0 }
   0xd   : > { %p164_p3 = scmp.eq.s32.totalorder %s858_s23, 1  ;;  %p859_p5 = scmp.ge.s32.totalorder %s1382_s21, 1 }
   0xe   : > { %p1454_p4 = por %p1742_p1, %p45_p0  ;;  %p171_p7 = scmp.lt.s32.totalorder %s1382_s21, 3 }
   0xf   : > { %p1459_p6 = por %p164_p3, %p45_p0  ;;  %s1384_s27 = smov [#allocation7]  }
  0x10   : > { %s1748_s24 = scalar_select %p1454_p4, 1, 0 }
  0x11   : > { %s1749_s25 = scalar_select %p1459_p6, 1, 0 }
  0x12   : > { %p1464_p8 = pnand %p859_p5, %p171_p7  ;;  %s183_s28 = sshll.u32 %s1384_s27, 4  ;;  %s1468_s28 = int_to_ptr.vmem [resolvable:$true] %s183_s28 }
  0x13   : > { %s1385_s30 = smov [#allocation8]   ;;  %s1752_s2 = sld [smem:[#allocation16_spill]] }
  0x14   : > { %s1750_s26 = scalar_select %p1464_p8, 1, 0 }
  0x15   : > { %p1115_p9 = pneg %p1464_p8  ;;  %s196_s6 = sshll.u32 %s1385_s30, 4  ;;  %s1479_s6 = int_to_ptr.vmem [resolvable:$true] %s196_s6 }
  0x17   : > { %p1475_p11 = pnand %p1115_p9, %p1742_p1 }
  0x19   : > { %s1188_s9 = scalar_lea.hbm %s1752_s2, 6144  ;;  %p1190_p13 = pneg %p1475_p11 }
  0x1a   : > { %p1189_p12 = scmp.ne.s32.totalorder %s1752_s2, %s1188_s9  ;;  %p1195_p5 = scmp.lt.u32.totalorder %s1188_s9, %s1752_s2 }
  0x1c   : > { %p1191_p0 = pnand %p1190_p13, %p1189_p12 }
  0x1e   : > { %p1192_p3 = pneg %p1191_p0 }
  0x20   : > { %p1197_p7 = pnand %p1195_p5, %p1192_p3 }
  0x22   : > { %1200 = shalt.err (!%p1197_p7)
}
  0x23   : > { %s1201_s14 = scalar_lea.vmem %s1468_s28, 6144  ;;  %p1209_p2 = scmp.lt.s32.totalorder %s1468_s28, %s1468_s28 }
  0x24   : > { %p1202_p9 = scmp.ne.s32.totalorder %s1468_s28, %s1201_s14  ;;  %p1210_p12 = scmp.lt.s32.totalorder %s1201_s14, %s1201_s14 }
  0x26   : > { %p1204_p10 = pnand %p1202_p9, %p1190_p13  ;;  %p1211_p0 = por %p1210_p12, %p1209_p2 }
  0x28   : > { %p1205_p1 = pneg %p1204_p10 }
  0x2a   : > { %p1212_p6 = pnand %p1211_p0, %p1205_p1 }
  0x2c   : > { %1215 = shalt.err (!%p1212_p6)
}
  0x2d   : > { %s1386_s15 = smov 384   ;;  %s1387_s16 = smov 24  }
  0x2e   : > { %1118 = dma.hbm_to_vmem [thread:$0]  (!%p1475_p11), %s1752_s2, 6144, %s1468_s28, [#allocation6], %s1386_s15, %s1386_s15, %s1387_s16  }
  0x2f   : > { %s1753_s3 = sld [smem:[#allocation17_spill]] }
  0x35   : > { %s1216_s7 = scalar_lea.hbm %s1753_s3, 6144 }
  0x36   : > { %p1217_p2 = scmp.ne.s32.totalorder %s1753_s3, %s1216_s7  ;;  %p1223_p10 = scmp.lt.u32.totalorder %s1216_s7, %s1753_s3 }
  0x38   : > { %p1219_p1 = pnand %p1217_p2, %p1190_p13 }
  0x3a   : > { %p1220_p6 = pneg %p1219_p1 }
  0x3c   : > { %p1225_p3 = pnand %p1223_p10, %p1220_p6 }
  0x3e   : > { %1228 = shalt.err (!%p1225_p3)
}
  0x3f   : > { %s1229_s28 = scalar_lea.vmem %s1479_s6, 6144  ;;  %p1237_p12 = scmp.lt.s32.totalorder %s1479_s6, %s1479_s6 }
  0x40   : > { %p1230_p5 = scmp.ne.s32.totalorder %s1479_s6, %s1229_s28  ;;  %p1238_p0 = scmp.lt.s32.totalorder %s1229_s28, %s1229_s28 }
  0x42   : > { %p1232_p7 = pnand %p1230_p5, %p1190_p13  ;;  %p1239_p2 = por %p1238_p0, %p1237_p12 }
  0x44   : > { %p1233_p9 = pneg %p1232_p7 }
  0x46   : > { %p1240_p1 = pnand %p1239_p2, %p1233_p9 }
  0x48   : > { %1243 = shalt.err (!%p1240_p1)
}
  0x49   : > { %1121 = dma.hbm_to_vmem [thread:$0]  (!%p1475_p11), %s1753_s3, 6144, %s1479_s6, [#allocation9], %s1386_s15, %s1386_s15, %s1387_s16  }
  0x4a   : > { %s1534_s14 = sadd.s32 1, %s1382_s21   ;;  %s32_s29 = sadd.s32 1, %s1378_s20 }
  0x4b   : > { %s29_s17 = ssub.s32 %s1382_s21, %s1534_s14  ;;  %p39_p13 = scmp.ne.s32.totalorder %s1378_s20, %s1374_s19 }
  0x4c   : > { %p30_p6 = scmp.eq.s32.totalorder %s29_s17, 0  ;;  %p40_p10 = scmp.eq.s32.totalorder %s1382_s21, 0 }
  0x4d   : > { %p1754_p3 = scmp.eq.s32.totalorder %s1445_s22, 1  ;;  %p1135_p7 = scmp.lt.s32.totalorder %s1382_s21, 2 }
  0x4e   : > { %s1550_s27 = scalar_select %p30_p6, %s1378_s20, %s32_s29  }
  0x4f   : > { %p1544_p5 = por %p1754_p3, %p39_p13  ;;  %p41_p9 = por %p40_p10, %p39_p13 }
  0x50   : > { %s213_s30 = sand.u32 1, %s1378_s20   ;;  %s864_s15 = sshll.u32 %s1382_s21, 7 }
  0x51   : > { %s1755_s23 = scalar_select %p1544_p5, 1, 0 }
  0x52   : > { %s1553_s6 = sshll.u32 %s213_s30, 3  ;;  %s1559_s8 = scalar_lea.hbm %s1736_s0, %s864_s15 }
  0x53   : > { %s217_s9 = scalar_lea.vmem [#allocation2], %s1553_s6  ;;  %p1564_p11 = pnand %p1135_p7, %p41_p9 }
  0x54   : > { %s224_s10 = sshll.u32 %s217_s9, 4  ;;  %s1571_s13 = scalar_lea.hbm %s1737_s1, %s864_s15  ;;  %s1562_s10 = int_to_ptr.vmem [resolvable:$true] %s224_s10 }
  0x55   : > { %s231_s29 = sand.u32 1, %s1382_s21   ;;  %s214_s17 = scalar_lea.sflag [#allocation3], %s213_s30 }
  0x56   : > { %s1244_s16 = scalar_lea.hbm %s1559_s8, 128  ;;  %p1246_p0 = pneg %p1564_p11 }
  0x57   : > { %p1245_p12 = scmp.ne.s32.totalorder %s1559_s8, %s1244_s16  ;;  %s1249_s2 = scalar_lea.hbm %s1736_s0, 256 }
  0x58   : > { %p1250_p13 = scmp.lt.u32.totalorder %s1559_s8, %s1736_s0  ;;  %p1251_p6 = scmp.lt.u32.totalorder %s1249_s2, %s1244_s16 }
  0x59   : > { %p1247_p2 = pnand %p1246_p0, %p1245_p12  ;;  %p1253_p3 = scmp.lt.u32.totalorder %s1244_s16, %s1559_s8 }
  0x5a   : > { %p1252_p10 = por %p1251_p6, %p1250_p13 }
  0x5b   : > { %p1248_p1 = pneg %p1247_p2 }
  0x5c   : > { %p1254_p7 = por %p1253_p3, %p1252_p10 }
  0x5e   : > { %p1255_p9 = pnand %p1254_p7, %p1248_p1 }
  0x60   : > { %1258 = shalt.err (!%p1255_p9)
}
  0x61   : > { %s1259_s30 = scalar_lea.vmem %s1562_s10, 128  ;;  %s1388_s15 = smov [#allocation2]  }
  0x62   : > { %p1260_p12 = scmp.ne.s32.totalorder %s1562_s10, %s1259_s30  ;;  %s1264_s12 = sshll.u32 %s1388_s15, 4  ;;  %s1265_s12 = int_to_ptr.vmem [resolvable:$false] %s1264_s12 }
  0x63   : > { %s1266_s3 = scalar_lea.vmem %s1265_s12, 256  ;;  %p1267_p4 = scmp.lt.s32.totalorder %s1562_s10, %s1265_s12 }
  0x64   : > { %p1262_p2 = pnand %p1260_p12, %p1246_p0  ;;  %p1268_p13 = scmp.lt.s32.totalorder %s1266_s3, %s1259_s30 }
  0x66   : > { %p1263_p5 = pneg %p1262_p2  ;;  %p1269_p6 = por %p1268_p13, %p1267_p4 }
  0x68   : > { %p1270_p10 = pnand %p1269_p6, %p1263_p5 }
  0x6a   : > { %1273 = shalt.err (!%p1270_p10)
}
  0x6b   : > { %1125 = dma.hbm_to_vmem [thread:$0]  (!%p1564_p11), %s1559_s8, 128, %s1562_s10, %s214_s17  }
  0x6c   : > { %s235_s2 = scalar_lea.vmem [#allocation5], %s1553_s6  ;;  %s232_s7 = scalar_lea.sflag [#allocation6], %s231_s29 }
  0x6d   : > { %s242_s16 = sshll.u32 %s235_s2, 4  ;;  %s1274_s9 = scalar_lea.hbm %s1571_s13, 128  ;;  %s243_s16 = int_to_ptr.vmem [resolvable:$true] %s242_s16 }
  0x6e   : > { %p1275_p4 = scmp.ne.s32.totalorder %s1571_s13, %s1274_s9  ;;  %s1279_s15 = scalar_lea.hbm %s1737_s1, 256 }
  0x6f   : > { %p1280_p3 = scmp.lt.u32.totalorder %s1571_s13, %s1737_s1  ;;  %p1281_p7 = scmp.lt.u32.totalorder %s1279_s15, %s1274_s9 }
  0x70   : > { %p1277_p5 = pnand %p1275_p4, %p1246_p0  ;;  %p1283_p12 = scmp.lt.u32.totalorder %s1274_s9, %s1571_s13 }
  0x71   : > { %p1282_p9 = por %p1281_p7, %p1280_p3 }
  0x72   : > { %p1278_p1 = pneg %p1277_p5 }
  0x73   : > { %p1284_p2 = por %p1283_p12, %p1282_p9 }
  0x75   : > { %p1285_p13 = pnand %p1284_p2, %p1278_p1 }
  0x77   : > { %1288 = shalt.err (!%p1285_p13)
}
  0x78   : > { %s1289_s6 = scalar_lea.vmem %s243_s16, 128  ;;  %s1389_s8 = smov [#allocation5]  }
  0x79   : > { %p1290_p6 = scmp.ne.s32.totalorder %s243_s16, %s1289_s6  ;;  %s1294_s10 = sshll.u32 %s1389_s8, 4  ;;  %s1295_s10 = int_to_ptr.vmem [resolvable:$false] %s1294_s10 }
  0x7a   : > { %s1296_s29 = scalar_lea.vmem %s1295_s10, 256  ;;  %p1297_p5 = scmp.lt.s32.totalorder %s243_s16, %s1295_s10 }
  0x7b   : > { %p1292_p10 = pnand %p1290_p6, %p1246_p0  ;;  %p1298_p8 = scmp.lt.s32.totalorder %s1296_s29, %s1289_s6 }
  0x7d   : > { %p1293_p4 = pneg %p1292_p10  ;;  %p1299_p3 = por %p1298_p8, %p1297_p5 }
  0x7f   : > { %p1300_p7 = pnand %p1299_p3, %p1293_p4 }
  0x81   : > { %1303 = shalt.err (!%p1300_p7)
}
  0x82   : > { %1128 = dma.hbm_to_vmem [thread:$0]  (!%p1564_p11), %s1571_s13, 128, %s243_s16, %s232_s7  }
  0x83   : > { %p1757_p1 = scmp.ne.s32.totalorder %s1750_s26, 0 }
  0x84   : > { %s1624_s17 = sand.u32 (!%p1757_p1), 1, %s1374_s19   ;;  %p1758_p8 = scmp.ne.s32.totalorder (!%p1757_p1), %s1748_s24, 0 }
  0x85   : > { %251 = sbr.rel (%p1757_p1) target bundleno = 492 (0x1ec), region = 40  ;;  %s1627_s2 = sshll.u32 (!%p1757_p1), %s1624_s17, 3 }
  0x86   : > { %s254_s9 = scalar_lea.sflag (!%p1757_p1), [#allocation3], %s1624_s17  ;;  %s257_s28 = scalar_lea.vmem (!%p1757_p1), [#allocation2], %s1627_s2 }
  0x8c   : > { %1349 = dma.done.wait (%p1758_p8), %s254_s9, 128  }
  0x8d   : > { %1351 = vsyncadd (%p1758_p8), %s254_s9, 4294967168  ;;  %s262_s26 = sand.u32 1, %s1445_s22   ;;  %s266_s13 = scalar_lea.vmem [#allocation5], %s1627_s2 }
  0x8e   : > { %s263_s11 = scalar_lea.sflag [#allocation6], %s262_s26 }
  0x8f   : > { %1353 = dma.done.wait (%p1758_p8), %s263_s11, 128  }
  0x90   : > { %1355 = vsyncadd (%p1758_p8), %s263_s11, 4294967168  ;;  %p1759_p11 = scmp.eq.s32.totalorder %s1445_s22, 0 }
  0x92   : > { %1357 = dma.done.wait (%p1759_p11), [#allocation6], 6144   ;;  %p1760_p0 = pmov %p1759_p11 }
  0x94   : > { %1359 = vsyncadd (%p1760_p0), [#allocation6], 4294961152  ;;  %p1761_p9 = pmov %p1760_p0 }
  0x95   : > { %p1762_p12 = pmov %p1760_p0 }
  0x96   : > { %1361 = dma.done.wait (%p1761_p9), [#allocation9], 6144  }
  0x97   : > { %1363 = vsyncadd (%p1762_p12), [#allocation9], 4294961152  ;;  %v1390_v0 = vmov 0.0|0.0   ;;  %v1391_v1 = vmov 0.0   ;;  %vm1392_vm0 = vmmov 0   ;;  %v309_v2 = vld [vmem:[#allocation7 + $0x8] sm:$0xff] }
  0x98   : > { %1019 = vmatprep.subr.bf16.mxu1 %v1390_v0  ;;  %420 = vmatprep.mubr.f32.mxu0 %v1391_v1  ;;  %v312_v3 = vld [vmem:[#allocation7 + $0x20] sm:$0xff]  ;;  %v311_v6 = vld [vmem:[#allocation7 + $0x18] sm:$0xff]  ;;  %v318_v8 = vld [vmem:[#allocation7 + $0x50] sm:$0xff]  ;;  %s880_s8 = sshll.u32 %s1445_s22, 7  ;;  %s305_s10 = scalar_lea.vmem [#allocation10], %s1627_s2 }
  0x99   : > { %949 = vmatprep.mubr.msk.f32.mxu1 %vm1392_vm0, %v1391_v1  ;;  %v308_v4 = vld [vmem:[#allocation7] sm:$0xff]  ;;  %v987_v5 = vpack.c.bf16 %v312_v3, %v309_v2  ;;  %v315_v7 = vld [vmem:[#allocation7 + $0x38] sm:$0xff]  ;;  %v314_v11 = vld [vmem:[#allocation7 + $0x30] sm:$0xff]  ;;  %s746_s29 = sshll.u32 %s305_s10, 4  ;;  %s1692_s26 = scalar_lea.hbm %s1741_s5, %s880_s8  ;;  %s1694_s29 = int_to_ptr.vmem [resolvable:$true] %s746_s29 }
  0x9a   : > { %v989_v9 = vpack.c.bf16 %v311_v6, %v308_v4  ;;  %v991_v10 = vpack.c.bf16 %v318_v8, %v315_v7  ;;  %v317_v12 = vld [vmem:[#allocation7 + $0x48] sm:$0xff]  ;;  %v324_v14 = vld [vmem:[#allocation7 + $0x80] sm:$0xff]  ;;  %v323_v18 = vld [vmem:[#allocation7 + $0x78] sm:$0xff]  ;;  %s733_s11 = scalar_lea.sflag [#allocation4], %s1624_s17  ;;  %p1763_p13 = scmp.ne.s32.totalorder %s1755_s23, 0 }
  0x9b   : > { %v321_v13 = vld [vmem:[#allocation7 + $0x68] sm:$0xff]  ;;  %988 = vmatprep.subr.bf16.mxu0 %v987_v5  ;;  %v993_v15 = vpack.c.bf16 %v317_v12, %v314_v11  ;;  %v320_v17 = vld [vmem:[#allocation7 + $0x60] sm:$0xff]  ;;  %v327_v19 = vld [vmem:[#allocation7 + $0x98] sm:$0xff]  ;;  %s1393_s22 = smov [#allocation10]  }
  0x9c   : > { %990 = vmatpush1.bf16.msra.mxu0 %v989_v9  ;;  %v995_v16 = vpack.c.bf16 %v324_v14, %v321_v13  ;;  %v330_v20 = vld [vmem:[#allocation7 + $0xb0] sm:$0xff]  ;;  %v997_v21 = vpack.c.bf16 %v323_v18, %v320_v17  ;;  %v329_v24 = vld [vmem:[#allocation7 + $0xa8] sm:$0xff]  ;;  %v336_v28 = vld [vmem:[#allocation7 + $0xe0] sm:$0xff]  ;;  %s1308_s2 = sshll.u32 %s1393_s22, 4  ;;  %s1309_s2 = int_to_ptr.vmem [resolvable:$false] %s1308_s2 }
  0x9d   : > { %992 = vmatprep.subr.bf16.mxu0 %v991_v10  ;;  %v326_v22 = vld [vmem:[#allocation7 + $0x90] sm:$0xff]  ;;  %v999_v23 = vpack.c.bf16 %v330_v20, %v327_v19  ;;  %v313_v26 = vld [vmem:[#allocation7 + $0x28] sm:$0xff]  ;;  %v316_v30 = vld [vmem:[#allocation7 + $0x40] sm:$0xff]  ;;  %s1310_s24 = scalar_lea.vmem %s1309_s2, 256  ;;  %p1311_p4 = scmp.lt.s32.totalorder %s1694_s29, %s1309_s2 }
  0x9e   : > { %v310_v25 = vld [vmem:[#allocation7 + $0x10] sm:$0xff]  ;;  %v333_v27 = vld [vmem:[#allocation7 + $0xc8] sm:$0xff]  ;;  %v319_v31 = vld [vmem:[#allocation7 + $0x58] sm:$0xff]  ;;  %v1001_v32 = vpack.c.bf16 %v329_v24, %v326_v22 }
  0x9f   : > { %v1020_v29 = vpack.c.bf16 %v313_v26, %v310_v25  ;;  %v1023_v33 = vpack.c.bf16 %v319_v31, %v316_v30  ;;  %v1003_v34 = vpack.c.bf16 %v336_v28, %v333_v27  ;;  %v332_v35 = vld [vmem:[#allocation7 + $0xc0] sm:$0xff]  ;;  %v335_v36 = vld [vmem:[#allocation7 + $0xd8] sm:$0xff]  ;;  %v322_v37 = vld [vmem:[#allocation7 + $0x70] sm:$0xff] }
  0xa0   : > { %994 = vmatpush1.bf16.msra.mxu0 %v993_v15  ;;  %v339_v38 = vld [vmem:[#allocation7 + $0xf8] sm:$0xff]  ;;  %v342_v39 = vld [vmem:[#allocation7 + $0x110] sm:$0xff]  ;;  %v325_v40 = vld [vmem:[#allocation7 + $0x88] sm:$0xff]  ;;  %v1005_v41 = vpack.c.bf16 %v335_v36, %v332_v35 }
  0xa1   : > { %996 = vmatprep.subr.bf16.mxu0 %v995_v16  ;;  %1021 = vmatpush3.bf16.msra.mxu1 %v1020_v29  ;;  %v338_v42 = vld [vmem:[#allocation7 + $0xf0] sm:$0xff]  ;;  %v1026_v43 = vpack.c.bf16 %v325_v40, %v322_v37  ;;  %v1007_v44 = vpack.c.bf16 %v342_v39, %v339_v38  ;;  %v341_v45 = vld [vmem:[#allocation7 + $0x108] sm:$0xff]  ;;  %v328_v46 = vld [vmem:[#allocation7 + $0xa0] sm:$0xff] }
  0xa2   : > { %1022 = vmatprep.subr.bf16.mxu1 %v1390_v0  ;;  %v331_v47 = vld [vmem:[#allocation7 + $0xb8] sm:$0xff]  ;;  %v345_v48 = vld [vmem:[#allocation7 + $0x128] sm:$0xff]  ;;  %v348_v49 = vld [vmem:[#allocation7 + $0x140] sm:$0xff]  ;;  %v1009_v50 = vpack.c.bf16 %v341_v45, %v338_v42 }
  0xa3   : > { %v344_v51 = vld [vmem:[#allocation7 + $0x120] sm:$0xff]  ;;  %v1029_v52 = vpack.c.bf16 %v331_v47, %v328_v46  ;;  %v1011_v53 = vpack.c.bf16 %v348_v49, %v345_v48  ;;  %v347_v54 = vld [vmem:[#allocation7 + $0x138] sm:$0xff]  ;;  %v334_v55 = vld [vmem:[#allocation7 + $0xd0] sm:$0xff] }
  0xa4   : > { %998 = vmatpush1.bf16.msra.mxu0 %v997_v21  ;;  %v337_v56 = vld [vmem:[#allocation7 + $0xe8] sm:$0xff]  ;;  %v351_v57 = vld [vmem:[#allocation7 + $0x158] sm:$0xff]  ;;  %v354_v58 = vld [vmem:[#allocation7 + $0x170] sm:$0xff]  ;;  %v1013_v59 = vpack.c.bf16 %v347_v54, %v344_v51 }
  0xa5   : > { %1000 = vmatprep.subr.bf16.mxu0 %v999_v23  ;;  %1024 = vmatpush3.bf16.msra.mxu1 %v1023_v33  ;;  %v350_v60 = vld [vmem:[#allocation7 + $0x150] sm:$0xff]  ;;  %v1032_v61 = vpack.c.bf16 %v337_v56, %v334_v55  ;;  %v1015_v62 = vpack.c.bf16 %v354_v58, %v351_v57  ;;  %v353_v63 = vld [vmem:[#allocation7 + $0x168] sm:$0xff]  ;;  %v340_v2 = vld [vmem:[#allocation7 + $0x100] sm:$0xff] }
  0xa6   : > { %1025 = vmatprep.subr.bf16.mxu1 %v1390_v0  ;;  %v343_v3 = vld [vmem:[#allocation7 + $0x118] sm:$0xff]  ;;  %v498_v4 = vld [vmem:[#allocation8 + $0x8] sm:$0xff]  ;;  %v501_v5 = vld [vmem:[#allocation8 + $0x20] sm:$0xff]  ;;  %v1017_v6 = vpack.c.bf16 %v353_v63, %v350_v60 }
  0xa7   : > { %v497_v7 = vld [vmem:[#allocation8] sm:$0xff]  ;;  %v1035_v8 = vpack.c.bf16 %v343_v3, %v340_v2  ;;  %v1043_v9 = vpack.c.bf16 %v501_v5, %v498_v4  ;;  %v500_v10 = vld [vmem:[#allocation8 + $0x18] sm:$0xff]  ;;  %v346_v11 = vld [vmem:[#allocation7 + $0x130] sm:$0xff] }
  0xa8   : > { %1002 = vmatpush1.bf16.msra.mxu0 %v1001_v32  ;;  %v349_v12 = vld [vmem:[#allocation7 + $0x148] sm:$0xff]  ;;  %v504_v13 = vld [vmem:[#allocation8 + $0x38] sm:$0xff]  ;;  %v507_v14 = vld [vmem:[#allocation8 + $0x50] sm:$0xff]  ;;  %v1045_v16 = vpack.c.bf16 %v500_v10, %v497_v7 }
  0xa9   : > { %1004 = vmatprep.subr.bf16.mxu0 %v1003_v34  ;;  %1027 = vmatpush3.bf16.msra.mxu1 %v1026_v43  ;;  %v306_v15 = vld [vmem:[%s257_s28] sm:$0xff]  ;;  %v503_v17 = vld [vmem:[#allocation8 + $0x30] sm:$0xff]  ;;  %v1038_v18 = vpack.c.bf16 %v349_v12, %v346_v11  ;;  %v1047_v19 = vpack.c.bf16 %v507_v14, %v504_v13  ;;  %v355_v22 = vld [vmem:[#allocation7 + $0x178] sm:$0xff] }
  0xaa   : > { %1028 = vmatprep.subr.bf16.mxu1 %v1390_v0  ;;  %v506_v20 = vld [vmem:[#allocation8 + $0x48] sm:$0xff]  ;;  %v352_v21 = vld [vmem:[#allocation7 + $0x160] sm:$0xff]  ;;  %v512_v29 = vld [vmem:[#allocation8 + $0x78] sm:$0xff] }
  0xab   : > { %v510_v23 = vld [vmem:[#allocation8 + $0x68] sm:$0xff]  ;;  %v513_v24 = vld [vmem:[#allocation8 + $0x80] sm:$0xff]  ;;  %v1049_v25 = vpack.c.bf16 %v506_v20, %v503_v17  ;;  %v1041_v27 = vpack.c.bf16 %v355_v22, %v352_v21  ;;  %v499_v30 = vld [vmem:[#allocation8 + $0x10] sm:$0xff] }
  0xac   : > { %1006 = vmatpush1.bf16.msra.mxu0 %v1005_v41  ;;  %v509_v26 = vld [vmem:[#allocation8 + $0x60] sm:$0xff]  ;;  %v1051_v28 = vpack.c.bf16 %v513_v24, %v510_v23  ;;  %v502_v31 = vld [vmem:[#allocation8 + $0x28] sm:$0xff]  ;;  %v516_v32 = vld [vmem:[#allocation8 + $0x98] sm:$0xff] }
  0xad   : > { %1008 = vmatprep.subr.bf16.mxu0 %v1007_v44  ;;  %1030 = vmatpush3.bf16.msra.mxu1 %v1029_v52  ;;  %v519_v33 = vld [vmem:[#allocation8 + $0xb0] sm:$0xff]  ;;  %v1053_v34 = vpack.c.bf16 %v512_v29, %v509_v26  ;;  %v1076_v36 = vpack.c.bf16 %v502_v31, %v499_v30  ;;  %v518_v38 = vld [vmem:[#allocation8 + $0xa8] sm:$0xff]  ;;  %v505_v39 = vld [vmem:[#allocation8 + $0x40] sm:$0xff] }
  0xae   : > { %1031 = vmatprep.subr.bf16.mxu1 %v1390_v0  ;;  %v515_v35 = vld [vmem:[#allocation8 + $0x90] sm:$0xff]  ;;  %v1055_v37 = vpack.c.bf16 %v519_v33, %v516_v32  ;;  %v508_v40 = vld [vmem:[#allocation8 + $0x58] sm:$0xff]  ;;  %v522_v41 = vld [vmem:[#allocation8 + $0xc8] sm:$0xff] }
  0xaf   : > { %v525_v42 = vld [vmem:[#allocation8 + $0xe0] sm:$0xff]  ;;  %v1057_v43 = vpack.c.bf16 %v518_v38, %v515_v35  ;;  %v1079_v45 = vpack.c.bf16 %v508_v40, %v505_v39  ;;  %v524_v47 = vld [vmem:[#allocation8 + $0xd8] sm:$0xff]  ;;  %v511_v48 = vld [vmem:[#allocation8 + $0x70] sm:$0xff] }
  0xb0   : > { %1010 = vmatpush1.bf16.msra.mxu0 %v1009_v50  ;;  %v521_v44 = vld [vmem:[#allocation8 + $0xc0] sm:$0xff]  ;;  %v1059_v46 = vpack.c.bf16 %v525_v42, %v522_v41  ;;  %v514_v49 = vld [vmem:[#allocation8 + $0x88] sm:$0xff]  ;;  %v528_v50 = vld [vmem:[#allocation8 + $0xf8] sm:$0xff] }
  0xb1   : > { %1012 = vmatprep.subr.bf16.mxu0 %v1011_v53  ;;  %1033 = vmatpush3.bf16.msra.mxu1 %v1032_v61  ;;  %v531_v51 = vld [vmem:[#allocation8 + $0x110] sm:$0xff]  ;;  %v1061_v52 = vpack.c.bf16 %v524_v47, %v521_v44  ;;  %v1082_v54 = vpack.c.bf16 %v514_v49, %v511_v48  ;;  %v530_v56 = vld [vmem:[#allocation8 + $0x108] sm:$0xff]  ;;  %v517_v57 = vld [vmem:[#allocation8 + $0xa0] sm:$0xff] }
  0xb2   : > { %1034 = vmatprep.subr.bf16.mxu1 %v1390_v0  ;;  %v527_v53 = vld [vmem:[#allocation8 + $0xf0] sm:$0xff]  ;;  %v1063_v55 = vpack.c.bf16 %v531_v51, %v528_v50  ;;  %v520_v58 = vld [vmem:[#allocation8 + $0xb8] sm:$0xff]  ;;  %v537_v60 = vld [vmem:[#allocation8 + $0x140] sm:$0xff] }
  0xb3   : > { %v1065_v61 = vpack.c.bf16 %v530_v56, %v527_v53  ;;  %v1085_v63 = vpack.c.bf16 %v520_v58, %v517_v57  ;;  %v536_v2 = vld [vmem:[#allocation8 + $0x138] sm:$0xff]  ;;  %v523_v3 = vld [vmem:[#allocation8 + $0xd0] sm:$0xff]  ;;  %v526_v4 = vld [vmem:[#allocation8 + $0xe8] sm:$0xff] }
  0xb4   : > { %1014 = vmatpush1.bf16.msra.mxu0 %v1013_v59  ;;  %v534_v59 = vld [vmem:[#allocation8 + $0x128] sm:$0xff]  ;;  %v540_v5 = vld [vmem:[#allocation8 + $0x158] sm:$0xff]  ;;  %v529_v12 = vld [vmem:[#allocation8 + $0x100] sm:$0xff] }
  0xb5   : > { %1016 = vmatprep.subr.bf16.mxu0 %v1015_v62  ;;  %1036 = vmatpush3.bf16.msra.mxu1 %v1035_v8  ;;  %v533_v62 = vld [vmem:[#allocation8 + $0x120] sm:$0xff]  ;;  %v539_v8 = vld [vmem:[#allocation8 + $0x150] sm:$0xff]  ;;  %v542_v11 = vld [vmem:[#allocation8 + $0x168] sm:$0xff] }
  0xb6   : > { %1037 = vmatprep.subr.bf16.mxu1 %v1390_v0  ;;  %v1069_v7 = vpack.c.bf16 %v536_v2, %v533_v62  ;;  %v532_v13 = vld [vmem:[#allocation8 + $0x118] sm:$0xff]  ;;  %v1073_v14 = vpack.c.bf16 %v542_v11, %v539_v8  ;;  %v538_v17 = vld [vmem:[#allocation8 + $0x148] sm:$0xff]  ;;  %v541_v20 = vld [vmem:[#allocation8 + $0x160] sm:$0xff] }
  0xb7   : > { %v544_v21 = vld [vmem:[#allocation8 + $0x178] sm:$0xff]  ;;  %v875_v29 = vld [vmem:[%s1740_s4 + $0x1] ss:$0 sm:$0xff]  ;;  %v877_v40 = vld [vmem:[%s1740_s4 + $0x2] ss:$0 sm:$0xff] }
  0xb8   : > { %1018 = vmatpush1.bf16.msra.mxu0 %v1017_v6  ;;  %v543_v6 = vld [vmem:[#allocation8 + $0x170] sm:$0xff]  ;;  %v1097_v22 = vpack.c.bf16 %v544_v21, %v541_v20 }
  0xb9   : > { %1044 = vmatprep.subr.bf16.mxu0 %v1043_v9  ;;  %1039 = vmatpush3.bf16.msra.mxu1 %v1038_v18  ;;  %v1088_v9 = vpack.c.bf16 %v526_v4, %v523_v3  ;;  %v1071_v10 = vpack.c.bf16 %v543_v6, %v540_v5  ;;  %v307_v18 = vld [vmem:[%s266_s13] sm:$0xff]  ;;  %s1304_s13 = scalar_lea.vmem %s1694_s29, 128 }
  0xba   : > { %1040 = vmatprep.subr.bf16.mxu1 %v1390_v0  ;;  %p1305_p2 = scmp.ne.s32.totalorder %s1694_s29, %s1304_s13  ;;  %p1312_p5 = scmp.lt.s32.totalorder %s1310_s24, %s1304_s13 }
  0xbb   : > { %421 = vmatmul.mubr.f32.vlgmr.msra.gmra.mrb[0].mxu0 %v306_v15 }
  0xbc   : > { %1046 = vmatpush1.bf16.msra.mxu0 %v1045_v16  ;;  %609 = vmatprep.mubr.f32.mxu0 %v1391_v1  ;;  %v535_v16 = vld [vmem:[#allocation8 + $0x130] sm:$0xff]  ;;  %p1306_p6 = pnand %p1305_p2, %p1763_p13  ;;  %p1313_p3 = por %p1312_p5, %p1311_p4 }
  0xbd   : > { %1048 = vmatprep.subr.bf16.mxu0 %v1047_v19  ;;  %1042 = vmatpush3.bf16.msra.mxu1 %v1041_v27  ;;  %v1094_v19 = vpack.c.bf16 %v538_v17, %v535_v16 }
  0xbe   : > { %1075 = vmatprep.subr.bf16.mxu1 %v1390_v0  ;;  %p1307_p10 = pneg %p1306_p6 }
  0xc0   : > { %1050 = vmatpush1.bf16.msra.mxu0 %v1049_v25  ;;  %950 = vmatmul.mubr.f32.vlgmr.msra.gmra.mrb[0].mxu1 %v306_v15  ;;  %v1091_v15 = vpack.c.bf16 %v532_v13, %v529_v12  ;;  %v873_v25 = vld [vmem:[%s1740_s4] ss:$0 sm:$0xff]  ;;  %p1314_p7 = pnand %p1313_p3, %p1307_p10 }
  0xc1   : > { %1052 = vmatprep.subr.bf16.mxu0 %v1051_v28  ;;  %1077 = vmatpush3.bf16.msra.mxu1 %v1076_v36 }
  0xc2   : > { %1078 = vmatprep.subr.bf16.mxu1 %v1390_v0  ;;  %984 = vmatprep.mubr.msk.f32.mxu1 %vm1392_vm0, %v1391_v1  ;;  %v1067_v1 = vpack.c.bf16 %v537_v60, %v534_v59 }
  0xc4   : > { %1054 = vmatpush1.bf16.msra.mxu0 %v1053_v34 }
  0xc5   : > { %1056 = vmatprep.subr.bf16.mxu0 %v1055_v37  ;;  %1080 = vmatpush3.bf16.msra.mxu1 %v1079_v45  ;;  %v878_v37 = vld [vmem:[%s1740_s4 + $0x3] ss:$0 sm:$0xff] }
  0xc6   : > { %1081 = vmatprep.subr.bf16.mxu1 %v1390_v0 }
  0xc8   : > { %1058 = vmatpush1.bf16.msra.mxu0 %v1057_v43 }
  0xc9   : > { %1060 = vmatprep.subr.bf16.mxu0 %v1059_v46  ;;  %1083 = vmatpush3.bf16.msra.mxu1 %v1082_v54 }
  0xca   : > { %1084 = vmatprep.subr.bf16.mxu1 %v1390_v0 }
  0xcc   : > { %1062 = vmatpush1.bf16.msra.mxu0 %v1061_v52 }
  0xcd   : > { %1064 = vmatprep.subr.bf16.mxu0 %v1063_v55  ;;  %1086 = vmatpush3.bf16.msra.mxu1 %v1085_v63 }
  0xce   : > { %1087 = vmatprep.subr.bf16.mxu1 %v1390_v0 }
  0xd0   : > { %1066 = vmatpush1.bf16.msra.mxu0 %v1065_v61 }
  0xd1   : > { %1068 = vmatprep.subr.bf16.mxu0 %v1067_v1  ;;  %1089 = vmatpush3.bf16.msra.mxu1 %v1088_v9 }
  0xd2   : > { %1090 = vmatprep.subr.bf16.mxu1 %v1390_v0 }
  0xd4   : > { %1070 = vmatpush1.bf16.msra.mxu0 %v1069_v7 }
  0xd5   : > { %1072 = vmatprep.subr.bf16.mxu0 %v1071_v10  ;;  %1092 = vmatpush3.bf16.msra.mxu1 %v1091_v15 }
  0xd6   : > { %1093 = vmatprep.subr.bf16.mxu1 %v1390_v0 }
  0xd8   : > { %1074 = vmatpush1.bf16.msra.mxu0 %v1073_v14 }
  0xd9   : > { %1095 = vmatpush3.bf16.msra.mxu1 %v1094_v19 }
  0xda   : > { %1096 = vmatprep.subr.bf16.mxu1 %v1390_v0 }
  0xdb   : > { %610 = vmatmul.mubr.f32.vlgmr.msra.gmra.mrb[0].mxu0 %v307_v18 }
  0xdd   : > { %1098 = vmatpush3.bf16.msra.mxu1 %v1097_v22 }
  0xe0   : > { %985 = vmatmul.mubr.f32.vlgmr.msra.gmra.mrb[2].mxu1 %v307_v18 }
 0x193   : > { %v493_v23 = vpop.f32.mrb[0].mxu1 }
 0x194   : > { %v951_v24 = vpop.f32.mrb[1].mxu1  ;;  %v718_v42 = vadd.f32 %v877_v40, %v493_v23 }
 0x1ae   : > { %v611_v26 = vpop.f32.mrb[0].mxu0 }
 0x1af   : > { %v695_v27 = vadd.f32 %v873_v25, %v611_v26  ;;  %v613_v28 = vpop.f32.mrb[1].mxu0 }
 0x1b0   : > { %v707_v31 = vadd.f32 %v875_v29, %v613_v28 }
 0x1b1   : > { %v874_v30 = vmul.f32 -1.442695, %v695_v27 }
 0x1b2   : > { %v876_v32 = vmul.f32 -1.442695, %v707_v31 }
 0x1b3   : > { %1178 = vpow2.f32 %v874_v30  ;;  %v682_v0 = vpop.f32.mrb[2].mxu1 }
 0x1b4   : > { %v986_v33 = vpop.f32.mrb[3].mxu1  ;;  %1180 = vpow2.f32 %v876_v32  ;;  %v723_v39 = vadd.f32 %v878_v37, %v682_v0 }
 0x1bd   : > { %v1179_v34 = vpop.eup %1178 }
 0x1be   : > { %v699_v35 = vadd.f32 1.0, %v1179_v34  ;;  %v1181_v36 = vpop.eup %1180 }
 0x1bf   : > { %v711_v38 = vadd.f32 1.0, %v1181_v36 }
 0x1c0   : > { %1182 = vrcp.f32 %v699_v35 }
 0x1c1   : > { %1184 = vrcp.f32 %v711_v38 }
 0x1ca   : > { %v1183_v41 = vpop.eup %1182 }
 0x1cb   : > { %v724_v43 = vmul.f32 %v1183_v41, %v723_v39  ;;  %v1185_v45 = vpop.eup %1184 }
 0x1cc   : > { %v727_v46 = vsub.f32 1.0, %v1185_v45  ;;  %v729_v49 = vmul.f32 %v1185_v45, %v307_v18 }
 0x1cd   : > { %v725_v44 = vadd.f32 %v724_v43, %v718_v42 }
 0x1cf   : > { %1186 = vtanh.f32 %v725_v44 }
 0x1d9   : > { %v1187_v47 = vpop.eup %1186 }
 0x1da   : > { %v728_v48 = vmul.f32 %v1187_v47, %v727_v46 }
 0x1dc   : > { %v730_v50 = vadd.f32 %v729_v49, %v728_v48 }
 0x1de   : > { %731 = vst [vmem:[%s305_s10] sm:$0xff] %v730_v50 }
 0x1df   : > { %1317 = shalt.err (!%p1314_p7)
}
 0x1e0   : > { %s1318_s17 = scalar_lea.hbm %s1692_s26, 128  ;;  %s1322_s30 = scalar_lea.hbm %s1741_s5, 256 }
 0x1e1   : > { %p1319_p1 = scmp.ne.s32.totalorder %s1692_s26, %s1318_s17  ;;  %p1323_p0 = scmp.lt.u32.totalorder %s1692_s26, %s1741_s5 }
 0x1e2   : > { %p1324_p9 = scmp.lt.u32.totalorder %s1322_s30, %s1318_s17  ;;  %p1326_p2 = scmp.lt.u32.totalorder %s1318_s17, %s1692_s26 }
 0x1e3   : > { %p1320_p8 = pnand %p1319_p1, %p1763_p13 }
 0x1e4   : > { %p1325_p12 = por %p1324_p9, %p1323_p0 }
 0x1e5   : > { %p1321_p11 = pneg %p1320_p8 }
 0x1e6   : > { %p1327_p6 = por %p1326_p2, %p1325_p12 }
 0x1e8   : > { %p1328_p10 = pnand %p1327_p6, %p1321_p11 }
 0x1ea   : > { %1331 = shalt.err (!%p1328_p10)
}
 0x1eb   : > { %1113 = dma.vmem_to_hbm [thread:$0]  (%p1763_p13), %s1694_s29, 128, %s1692_s26, %s733_s11  }
 0x1ec PF: > { %s758_s3 = sand.u32 1, %s1370_s18   ;;  %p1764_p4 = scmp.ne.s32.totalorder %s1749_s25, 0 }
 0x1ed   : > { %p1765_p5 = scmp.ge.s32.totalorder %s1382_s21, 2  ;;  %s759_s6 = scalar_lea.sflag [#allocation4], %s758_s3 }
 0x1ef   : > { %p1130_p3 = pnand %p1765_p5, %p1764_p4 }
 0x1f1   : > { %1365 = dma.done.wait (!%p1130_p3), %s759_s6, 128  }
 0x1f2   : > { %1367 = vsyncadd (!%p1130_p3), %s759_s6, 4294967168  ;;  %p22_p7 = scmp.ge.s32.totalorder %s1534_s14, 4   ;;  %s1766_s18 = smov %s1374_s19 }
 0x1f3   : > { %s1767_s19 = smov %s1378_s20  ;;  %s1768_s20 = smov %s1550_s27 }
 0x1f4   : > { %s1769_s21 = smov %s1534_s14  ;;  %24 = sbr.rel (!%p22_p7) target bundleno = 11 (0xb), region = 106 }
 0x1fb   :  { %764 = vsyncpa [#allocation3], 1 }
 0x1fc   :  { %766 = vsyncpa [#allocation3 + $0x1], 1 }
 0x1fd   :  { %767 = vsyncpa [#allocation6], 1 }
 0x1fe   :  { %769 = vsyncpa [#allocation6 + $0x1], 1 }
 0x1ff   :  { %770 = vsyncpa [#allocation9], 1 }
 0x200   :  { %771 = vsyncpa [#allocation4], 1 }
 0x201   :  { %773 = vsyncpa [#allocation4 + $0x1], 1 }

</bundles_post_ra>
